<compile_context>
chip_gen: v7x
topology: tpu7x:2x2x1
jax: 0.10.0
libtpu: 0.0.40
codegen_flags: <defaults>
</compile_context>

<pallas_src>
import jax
import jax.numpy as jnp
from jax.experimental import pallas as pl
from jax.experimental.pallas import tpu as pltpu

FEAT_DIM = 1000      # backbone output dim (ImageNet logits), per the module
NUM_CLASSES = 7
BN_EPS = 1e-5        # PyTorch BatchNorm1d default

F_PAD = 1024         # FEAT_DIM padded to a lane multiple (128)
N_PAD = 8            # classifier cols padded 7 -> 8 (one tiny tile; masked vst is free)
B_SUBLANE = 16       # batch padded to the bf16 sublane packing


def _round_up(x, m):
    return ((x + m - 1) // m) * m


def _bn_relu_linear(f, b_real, gamma, beta, w):
    """Train-mode BatchNorm1d (batch stats) -> ReLU -> Linear on one F chunk.

    f:     (B_pad, Fc) f32 features; rows >= b_real are zero padding.
    gamma: (1, Fc)  beta: (1, Fc)  w: (Fc, N_PAD)  (rows of W^T for this chunk).
    """
    b_pad = f.shape[0]
    inv_b = 1.0 / b_real.astype(jnp.float32)
    row_mask = jax.lax.broadcasted_iota(jnp.int32, (b_pad, 1), 0) < b_real

    # Two-pass batch statistics (biased variance = PyTorch train-mode semantics);
    # avoids the E[x^2]-E[x]^2 cancellation of the previous one-pass version.
    mean = jnp.sum(f, axis=0, keepdims=True) * inv_b       # padded rows contribute 0
    diff = jnp.where(row_mask, f - mean, 0.0)               # mask padded batch rows
    var = jnp.sum(diff * diff, axis=0, keepdims=True) * inv_b

    xhat = diff * jax.lax.rsqrt(var + BN_EPS)
    h = jnp.maximum(xhat * gamma + beta, 0.0)                # ReLU
    # Tiny matmul (B_pad x Fc x 8); f32 accumulate, negligible cost on any MXU.
    return jnp.dot(h, w, preferred_element_type=jnp.float32)


def _head_single_kernel(b_ref, x_ref, fw_ref, gamma_ref, beta_ref, w_ref, o_ref):
    """Single-K-step path: f = x @ Wfeat_chunk in one shot (no accumulator scratch)."""
    f = jnp.dot(x_ref[...], fw_ref[...], preferred_element_type=jnp.float32)
    y = _bn_relu_linear(f, b_ref[0], gamma_ref[...], beta_ref[...], w_ref[...])
    o_ref[...] = y[None].astype(o_ref.dtype)


def _head_tiled_kernel(b_ref, x_ref, fw_ref, gamma_ref, beta_ref, w_ref, o_ref,
                       acc_ref):
    """K-tiled path: accumulate f in VMEM, fuse BN/ReLU/Linear at the last K step."""
    k = pl.program_id(1)

    @pl.when(k == 0)
    def _():
        acc_ref[...] = jnp.zeros_like(acc_ref)

    acc_ref[...] += jnp.dot(x_ref[...], fw_ref[...],
                            preferred_element_type=jnp.float32)

    @pl.when(k == pl.num_programs(1) - 1)
    def _():
        y = _bn_relu_linear(acc_ref[...], b_ref[0], gamma_ref[...],
                            beta_ref[...], w_ref[...])
        o_ref[...] = y[None].astype(o_ref.dtype)


def finetune_head_fused(x_flat, params, *, num_f_chunks=2, max_single_kpad=4096,
                        tk_cap=2048):
    """Fused (stand-in) backbone projection + BatchNorm1d + ReLU + Linear(1000 -> 7).

    x_flat: (B, K_in) f32  ->  logits (B, NUM_CLASSES) f32.
    All weights come pre-padded / pre-cast from init_params (no per-call weight DMA
    churn in the wrapper).
    """
    fwp = params["feat_w_p"]                              # (K_pad, F_PAD) bf16
    gp, bp = params["bn_gamma_p"], params["bn_beta_p"]    # (1, F_PAD) f32
    wp, biasp = params["cls_w_p"], params["cls_b_p"]      # (F_PAD, N_PAD), (1, N_PAD)

    B, K_in = x_flat.shape
    assert K_in == params["feat_w"].shape[0], "input feature size mismatch"
    K_pad = fwp.shape[0]
    B_pad = max(_round_up(B, B_SUBLANE), B_SUBLANE)

    nf = num_f_chunks if F_PAD % (num_f_chunks * 128) == 0 else 1
    f_chunk = F_PAD // nf

    # Only the activations are padded per call; all pads are zeros and inert.
    xp = jnp.zeros((B_pad, K_pad), jnp.bfloat16).at[:B, :K_in].set(
        x_flat.astype(jnp.bfloat16))
    b_arr = jnp.array([B], jnp.int32)

    flops = 2 * B_pad * K_pad * F_PAD + 2 * B_pad * F_PAD * N_PAD
    bytes_accessed = (xp.size * 2 + fwp.size * 2
                      + (gp.size + bp.size + wp.size) * 4
                      + nf * B_pad * N_PAD * 4)
    cost = pl.CostEstimate(flops=flops, transcendentals=F_PAD,
                           bytes_accessed=bytes_accessed)
    out_shape = jax.ShapeDtypeStruct((nf, B_pad, N_PAD), jnp.float32)

    if K_pad <= max_single_kpad:
        # Whole K in one grid step: no accumulator round-trips, no pl.when guards.
        partials = pl.pallas_call(
            _head_single_kernel,
            out_shape=out_shape,
            grid_spec=pltpu.PrefetchScalarGridSpec(
                num_scalar_prefetch=1,
                grid=(nf,),
                in_specs=[
                    pl.BlockSpec((B_pad, K_pad), lambda f, b: (0, 0)),
                    pl.BlockSpec((K_pad, f_chunk), lambda f, b: (0, f)),
                    pl.BlockSpec((1, f_chunk), lambda f, b: (0, f)),
                    pl.BlockSpec((1, f_chunk), lambda f, b: (0, f)),
                    pl.BlockSpec((f_chunk, N_PAD), lambda f, b: (f, 0)),
                ],
                out_specs=pl.BlockSpec((1, B_pad, N_PAD), lambda f, b: (f, 0, 0)),
            ),
            compiler_params=pltpu.CompilerParams(
                dimension_semantics=("parallel",)),
            cost_estimate=cost,
        )(b_arr, xp, fwp, gp, bp, wp)
    else:
        # Large K: tile the reduction axis (last in the grid). TK <= 2048 keeps
        # the double-buffered weight tiles within default scoped-VMEM on
        # v5e (16 MiB) / v6e (32 MiB) / v7x (32 MiB).
        tk = max((min(tk_cap, K_pad) // 128) * 128, 128)
        while K_pad % tk != 0:
            tk -= 128
        grid_k = K_pad // tk
        partials = pl.pallas_call(
            _head_tiled_kernel,
            out_shape=out_shape,
            grid_spec=pltpu.PrefetchScalarGridSpec(
                num_scalar_prefetch=1,
                grid=(nf, grid_k),
                in_specs=[
                    pl.BlockSpec((B_pad, tk), lambda f, k, b: (0, k)),
                    pl.BlockSpec((tk, f_chunk), lambda f, k, b: (k, f)),
                    pl.BlockSpec((1, f_chunk), lambda f, k, b: (0, f)),
                    pl.BlockSpec((1, f_chunk), lambda f, k, b: (0, f)),
                    pl.BlockSpec((f_chunk, N_PAD), lambda f, k, b: (f, 0)),
                ],
                out_specs=pl.BlockSpec((1, B_pad, N_PAD),
                                       lambda f, k, b: (f, 0, 0)),
                scratch_shapes=[pltpu.VMEM((B_pad, f_chunk), jnp.float32)],
            ),
            compiler_params=pltpu.CompilerParams(
                dimension_semantics=("parallel", "arbitrary")),
            cost_estimate=cost,
        )(b_arr, xp, fwp, gp, bp, wp)

    # Sum the per-F-chunk partial logits and add the bias once (tiny (B,8) op).
    logits = jnp.sum(partials, axis=0) + biasp
    return logits[:B, :NUM_CLASSES]


def finetune_model_forward(x, params, extract_feature=False):
    """Mirror of FineTuneModel.forward for arch in {'pnasnet5large', 'resnet50', ...}."""
    B = x.shape[0]
    x_flat = x.reshape(B, -1)

    if extract_feature:
        # features(x) only: stand-in backbone projection (plain-JAX glue).
        return x_flat.astype(jnp.float32) @ params["feat_w"]

    # f = features(x); f = f.view(B, -1); y = classifier(relu(bn_c(f)))
    # — all fused into a single Pallas kernel.
    return finetune_head_fused(x_flat, params)


def init_params(key, in_features):
    k1, k2, k3 = jax.random.split(key, 3)
    # Stand-in backbone projection (glue, deterministic).
    feat_w = jax.random.normal(k1, (in_features, FEAT_DIM), jnp.float32) * 0.05
    # BatchNorm1d(1000) defaults: weight=1, bias=0.
    bn_gamma = jnp.ones((1, FEAT_DIM), jnp.float32)
    bn_beta = jnp.zeros((1, FEAT_DIM), jnp.float32)
    # Linear(1000, 7): PyTorch-style uniform(-1/sqrt(F), 1/sqrt(F)).
    bound = 1.0 / (FEAT_DIM ** 0.5)
    cls_w = jax.random.uniform(k2, (NUM_CLASSES, FEAT_DIM), jnp.float32,
                               minval=-bound, maxval=bound)
    cls_b = jax.random.uniform(k3, (1, NUM_CLASSES), jnp.float32,
                               minval=-bound, maxval=bound)

    # ---- kernel-ready padded / cast copies, built ONCE (not per forward call) ----
    K_pad = _round_up(in_features, 128)
    feat_w_p = jnp.zeros((K_pad, F_PAD), jnp.bfloat16).at[
        :in_features, :FEAT_DIM].set(feat_w.astype(jnp.bfloat16))
    bn_gamma_p = jnp.zeros((1, F_PAD), jnp.float32).at[:, :FEAT_DIM].set(bn_gamma)
    bn_beta_p = jnp.zeros((1, F_PAD), jnp.float32).at[:, :FEAT_DIM].set(bn_beta)
    cls_w_p = jnp.zeros((F_PAD, N_PAD), jnp.float32).at[
        :FEAT_DIM, :NUM_CLASSES].set(cls_w.T)
    cls_b_p = jnp.zeros((1, N_PAD), jnp.float32).at[:, :NUM_CLASSES].set(cls_b)

    return {
        "feat_w": feat_w, "bn_gamma": bn_gamma, "bn_beta": bn_beta,
        "cls_w_t": cls_w.T, "cls_b": cls_b,
        "feat_w_p": feat_w_p, "bn_gamma_p": bn_gamma_p, "bn_beta_p": bn_beta_p,
        "cls_w_p": cls_w_p, "cls_b_p": cls_b_p,
    }


if __name__ == "__main__":
    key = jax.random.PRNGKey(0)
    kx, kp = jax.random.split(key)

    # Small NCHW image batch, consistent with the module's conv-net input convention.
    B, C, H, W = 2, 4, 16, 16
    x = jax.random.normal(kx, (B, C, H, W), jnp.float32)
    params = init_params(kp, C * H * W)

    # Fused path (single-K-step kernel; F split on a "parallel" grid axis).
    y = finetune_model_forward(x, params, extract_feature=False)
    y = jax.block_until_ready(y)
    assert y.shape == (B, NUM_CLASSES), y.shape
    assert bool(jnp.all(jnp.isfinite(y)))

    # Pure-JAX reference.  x / feat_w are quantized to bf16 exactly as the kernel
    # stores them, isolating kernel logic; vs. a true-f32 PyTorch module the extra
    # delta is the bf16 storage rounding of the backbone projection (~1e-2 scale here).
    x_flat = x.reshape(B, -1)
    x_q = x_flat.astype(jnp.bfloat16).astype(jnp.float32)
    fw_q = params["feat_w"].astype(jnp.bfloat16).astype(jnp.float32)
    f = x_q @ fw_q                                              # (B, FEAT_DIM)
    mean = jnp.mean(f, axis=0, keepdims=True)
    var = jnp.mean((f - mean) ** 2, axis=0, keepdims=True)      # biased, train-mode BN
    h = jnp.maximum((f - mean) / jnp.sqrt(var + BN_EPS) * params["bn_gamma"]
                    + params["bn_beta"], 0.0)
    y_ref = h @ params["cls_w_t"] + params["cls_b"]

    err = float(jnp.max(jnp.abs(y - y_ref)))
    assert err < 2e-2, f"single-step path max err {err}"

    # Also exercise the K-tiled accumulator path (used only when the backbone weight
    # slab would not fit VMEM) by forcing tiling at this small shape.
    y_tiled = finetune_head_fused(x_flat, params, max_single_kpad=0, tk_cap=512)
    y_tiled = jax.block_until_ready(y_tiled)
    err_t = float(jnp.max(jnp.abs(y_tiled - y_ref)))
    assert err_t < 2e-2, f"tiled path max err {err_t}"

    print("KERNEL_OK")
</pallas_src>

<mosaic_0001>
module attributes {stable_mosaic.version = 11 : i64} {
  func.func @_head_single_kernel(%arg0: i32, %arg1: memref<1xi32, #tpu.memory_space<smem>>, %arg2: memref<16x1024xbf16, #tpu.memory_space<vmem>>, %arg3: memref<1024x512xbf16, #tpu.memory_space<vmem>>, %arg4: memref<1x512xf32, #tpu.memory_space<vmem>>, %arg5: memref<1x512xf32, #tpu.memory_space<vmem>>, %arg6: memref<512x8xf32, #tpu.memory_space<vmem>>, %arg7: memref<1x16x8xf32, #tpu.memory_space<vmem>>) attributes {dimension_semantics = [#tpu.dimension_semantics<parallel>], iteration_bounds = array<i64: 2>, scalar_prefetch = 1 : i64, scratch_operands = 0 : i64, tpu.core_type = #tpu.core_type<tc>, window_params = [{pipeline_mode = #tpu.pipeline_mode<synchronous>, transform_indices = @transform_0, window_bounds = array<i64: 16, 1024>}, {transform_indices = @transform_1, window_bounds = array<i64: 1024, 512>}, {transform_indices = @transform_2, window_bounds = array<i64: 1, 512>}, {transform_indices = @transform_3, window_bounds = array<i64: 1, 512>}, {transform_indices = @transform_4, window_bounds = array<i64: 512, 8>}, {transform_indices = @transform_5, window_bounds = array<i64: 1, 16, 8>}]} {
    %c0 = arith.constant 0 : index
    %c0_0 = arith.constant 0 : index
    %0 = vector.load %arg2[%c0, %c0_0] : memref<16x1024xbf16, #tpu.memory_space<vmem>>, vector<16x1024xbf16>
    %c0_1 = arith.constant 0 : index
    %c0_2 = arith.constant 0 : index
    %1 = vector.load %arg3[%c0_1, %c0_2] : memref<1024x512xbf16, #tpu.memory_space<vmem>>, vector<1024x512xbf16>
    %cst = arith.constant dense<0.000000e+00> : vector<16x512xf32>
    %2 = tpu.matmul %0, %1, %cst {dimension_numbers = #tpu.dot_dimension_numbers<[1], [0], [0], [1], [0, 0, 1, 1], [], []>} : vector<16x1024xbf16>, vector<1024x512xbf16>, vector<16x512xf32> -> vector<16x512xf32>
    %c0_3 = arith.constant 0 : index
    %3 = memref.load %arg1[%c0_3] : memref<1xi32, #tpu.memory_space<smem>>
    %c0_4 = arith.constant 0 : index
    %c0_5 = arith.constant 0 : index
    %4 = vector.load %arg4[%c0_4, %c0_5] : memref<1x512xf32, #tpu.memory_space<vmem>>, vector<1x512xf32>
    %c0_6 = arith.constant 0 : index
    %c0_7 = arith.constant 0 : index
    %5 = vector.load %arg5[%c0_6, %c0_7] : memref<1x512xf32, #tpu.memory_space<vmem>>, vector<1x512xf32>
    %c0_8 = arith.constant 0 : index
    %c0_9 = arith.constant 0 : index
    %6 = vector.load %arg6[%c0_8, %c0_9] : memref<512x8xf32, #tpu.memory_space<vmem>>, vector<512x8xf32>
    %7 = arith.sitofp %3 : i32 to f32
    %cst_10 = arith.constant 1.000000e+00 : f32
    %8 = arith.divf %cst_10, %7 : f32
    %9 = tpu.iota {dimensions = array<i32: 0>} : vector<16x1xi32>
    %10 = vector.broadcast %3 : i32 to vector<16x1xi32>
    %11 = arith.cmpi slt, %9, %10 : vector<16x1xi32>
    %cst_11 = arith.constant dense<0.000000e+00> : vector<512xf32>
    %12 = vector.multi_reduction <add>, %2, %cst_11 [0] : vector<16x512xf32> to vector<512xf32>
    %13 = vector.shape_cast %12 : vector<512xf32> to vector<1x512xf32>
    %14 = vector.broadcast %8 : f32 to vector<1x512xf32>
    %15 = arith.mulf %13, %14 : vector<1x512xf32>
    %16 = vector.broadcast %15 : vector<1x512xf32> to vector<16x512xf32>
    %17 = arith.subf %2, %16 : vector<16x512xf32>
    %cst_12 = arith.constant 0.000000e+00 : f32
    %18 = vector.shape_cast %11 : vector<16x1xi1> to vector<16x1xi1>
    %19 = vector.broadcast %18 : vector<16x1xi1> to vector<16x512xi1>
    %20 = vector.broadcast %cst_12 : f32 to vector<16x512xf32>
    %21 = arith.select %19, %17, %20 : vector<16x512xi1>, vector<16x512xf32>
    %22 = arith.mulf %21, %21 : vector<16x512xf32>
    %cst_13 = arith.constant dense<0.000000e+00> : vector<512xf32>
    %23 = vector.multi_reduction <add>, %22, %cst_13 [0] : vector<16x512xf32> to vector<512xf32>
    %24 = vector.shape_cast %23 : vector<512xf32> to vector<1x512xf32>
    %25 = vector.broadcast %8 : f32 to vector<1x512xf32>
    %26 = arith.mulf %24, %25 : vector<1x512xf32>
    %cst_14 = arith.constant 9.99999974E-6 : f32
    %27 = vector.broadcast %cst_14 : f32 to vector<1x512xf32>
    %28 = arith.addf %26, %27 : vector<1x512xf32>
    %29 = math.rsqrt %28 : vector<1x512xf32>
    %30 = vector.broadcast %29 : vector<1x512xf32> to vector<16x512xf32>
    %31 = arith.mulf %21, %30 : vector<16x512xf32>
    %32 = vector.broadcast %4 : vector<1x512xf32> to vector<16x512xf32>
    %33 = arith.mulf %31, %32 : vector<16x512xf32>
    %34 = vector.broadcast %5 : vector<1x512xf32> to vector<16x512xf32>
    %35 = arith.addf %33, %34 : vector<16x512xf32>
    %cst_15 = arith.constant 0.000000e+00 : f32
    %36 = vector.broadcast %cst_15 : f32 to vector<16x512xf32>
    %37 = arith.maximumf %35, %36 : vector<16x512xf32>
    %cst_16 = arith.constant dense<0.000000e+00> : vector<16x8xf32>
    %38 = tpu.matmul %37, %6, %cst_16 {dimension_numbers = #tpu.dot_dimension_numbers<[1], [0], [0], [1], [0, 0, 1, 1], [], []>} : vector<16x512xf32>, vector<512x8xf32>, vector<16x8xf32> -> vector<16x8xf32>
    %39 = vector.shape_cast %38 : vector<16x8xf32> to vector<1x16x8xf32>
    %c0_17 = arith.constant 0 : index
    %c0_18 = arith.constant 0 : index
    %c0_19 = arith.constant 0 : index
    %40 = vector.load %arg7[%c0_17, %c0_18, %c0_19] : memref<1x16x8xf32, #tpu.memory_space<vmem>>, vector<1x16x8xf32>
    tpu.vector_store %arg7[%c0_17, %c0_18, %c0_19], %39 {strides = array<i32>} : memref<1x16x8xf32, #tpu.memory_space<vmem>>, vector<1x16x8xf32>,
    return
  }
  func.func @transform_0(%arg0: i32, %arg1: memref<1xi32, #tpu.memory_space<smem>>) -> (i32, i32) {
    %c0_i32 = arith.constant 0 : i32
    %c0_i32_0 = arith.constant 0 : i32
    %c0_i32_1 = arith.constant 0 : i32
    return %c0_i32, %c0_i32_0 : i32, i32
  }
  func.func @transform_1(%arg0: i32, %arg1: memref<1xi32, #tpu.memory_space<smem>>) -> (i32, i32) {
    %c0_i32 = arith.constant 0 : i32
    %c0_i32_0 = arith.constant 0 : i32
    return %c0_i32, %arg0 : i32, i32
  }
  func.func @transform_2(%arg0: i32, %arg1: memref<1xi32, #tpu.memory_space<smem>>) -> (i32, i32) {
    %c0_i32 = arith.constant 0 : i32
    %c0_i32_0 = arith.constant 0 : i32
    return %c0_i32, %arg0 : i32, i32
  }
  func.func @transform_3(%arg0: i32, %arg1: memref<1xi32, #tpu.memory_space<smem>>) -> (i32, i32) {
    %c0_i32 = arith.constant 0 : i32
    %c0_i32_0 = arith.constant 0 : i32
    return %c0_i32, %arg0 : i32, i32
  }
  func.func @transform_4(%arg0: i32, %arg1: memref<1xi32, #tpu.memory_space<smem>>) -> (i32, i32) {
    %c0_i32 = arith.constant 0 : i32
    %c0_i32_0 = arith.constant 0 : i32
    return %arg0, %c0_i32 : i32, i32
  }
  func.func @transform_5(%arg0: i32, %arg1: memref<1xi32, #tpu.memory_space<smem>>) -> (i32, i32, i32) {
    %c0_i32 = arith.constant 0 : i32
    %c0_i32_0 = arith.constant 0 : i32
    %c0_i32_1 = arith.constant 0 : i32
    return %arg0, %c0_i32, %c0_i32_0 : i32, i32, i32
  }
}

</mosaic_0001>

<bundles_post_ra>
// kernel: tpu_custom_call.1
= control target key start
LH: loop header
LB: loop body
LE: loop exit
PB: predicated region body
PF: predicated region fallthrough
CT: control target
= control target key end

     0   :  { %s4623_s0 = inlined_call_operand.<no memory space> [shape: s32[1], index: 0, kind: input, shape index: {}]   ;;  %s4624_s1 = inlined_call_operand.hbm [shape: bf16[16,1024], index: 1, kind: input, shape index: {}]   ;;  %s4625_s2 = inlined_call_operand.hbm [shape: bf16[1024,1024], index: 2, kind: input, shape index: {}]   ;;  %s4626_s3 = inlined_call_operand.hbm [shape: f32[1,1024], index: 3, kind: input, shape index: {}]   ;;  %s4627_s4 = inlined_call_operand.hbm [shape: f32[1,1024], index: 4, kind: input, shape index: {}]   ;;  %s4628_s5 = inlined_call_operand.vmem [shape: f32[1024,8], index: 5, kind: input, shape index: {}]   ;;  %s4629_s6 = inlined_call_operand.vmem [shape: f32[2,16,8], index: 6, kind: output, shape index: {}]  }
   0x1   :  { %4639 = sst [smem:[#allocation14_spill]] %s4625_s2 }
   0x2   :  { %11 = sst [smem:[#allocation3]] %s4623_s0 }
   0x3   :  { %12 = vsyncpa [#allocation5], 0 }
   0x4   :  { %13 = vsyncpa [#allocation7], 0 }
   0x5   :  { %15 = vsyncpa [#allocation7 + $0x1], 0 }
   0x6   :  { %16 = vsyncpa [#allocation10], 0 }
   0x7   :  { %18 = vsyncpa [#allocation10 + $0x1], 0  ;;  %s3951_s23 = smov 0   ;;  %s3953_s24 = smov 0  }
   0x8   :  { %s3955_s25 = smov 0   ;;  %s3957_s26 = smov 0  }
   0x9 LB: > { %s3972_s0 = sadd.s32 1, %s3903_s26   ;;  %s52_s27 = sadd.s32 1, %s3899_s25  ;;  %s3903_s26 = sphi %s3957_s26, %s4662_s26   ;;  %s3899_s25 = sphi %s3955_s25, %s4661_s25   ;;  %s3895_s24 = sphi %s3953_s24, %s4660_s24   ;;  %s3891_s23 = sphi %s3951_s23, %s4659_s23  }
   0xa   : > { %s49_s28 = ssub.s32 %s3903_s26, %s3972_s0  ;;  %p59_p0 = scmp.ne.s32.totalorder %s3899_s25, %s3895_s24 }
   0xb   : > { %p50_p1 = scmp.eq.s32.totalorder %s49_s28, 0  ;;  %p60_p2 = scmp.eq.s32.totalorder %s3903_s26, 0 }
   0xc   : > { %p3310_p4 = scmp.lt.s32.totalorder %s3903_s26, 2  ;;  %s206_s30 = sand.u32 1, %s3903_s26  }
   0xd   : > { %s3981_s29 = scalar_select %p50_p1, %s3899_s25, %s52_s27  }
   0xe   : > { %p61_p3 = por %p60_p2, %p59_p0  ;;  %s3986_s7 = sand.u32 1, %s3899_s25  }
   0xf   : > { %s2831_s8 = sshll.u32 %s3986_s7, 11  ;;  %s3115_s9 = sshll.u32 %s3903_s26, 8 }
  0x10   : > { %s4640_s2 = sld [smem:[#allocation14_spill]]  ;;  %s210_s13 = scalar_lea.vmem [#allocation6], %s2831_s8 }
  0x11   : > { %s217_s14 = sshll.u32 %s210_s13, 4  ;;  %p3997_p5 = pnand %p3310_p4, %p61_p3  ;;  %s3995_s14 = int_to_ptr.vmem [resolvable:$true] %s217_s14 }
  0x12   : > { %s4001_s16 = scalar_lea.sflag [#allocation7], %s206_s30 }
  0x13   : > { %s4641_s15 = scalar_select %p3997_p5, 1, 0 }
  0x14   : > { %p4007_p7 = pneg %p3997_p5 }
  0x16   : > { %s3993_s12 = scalar_lea.hbm %s4640_s2, %s3115_s9  ;;  %s3748_s21 = scalar_lea.hbm %s4640_s2, 65536 }
  0x17   : > { %s3743_s17 = scalar_lea.hbm %s3993_s12, 32768  ;;  %p3749_p10 = scmp.lt.u32.totalorder %s3993_s12, %s4640_s2 }
  0x18   : > { %p3744_p6 = scmp.ne.s32.totalorder %s3993_s12, %s3743_s17  ;;  %p3750_p11 = scmp.lt.u32.totalorder %s3748_s21, %s3743_s17 }
  0x19   : > { %s4642_s18 = scalar_select %p4007_p7, 1, 0 }
  0x1a   : > { %p3746_p8 = pnand %p4007_p7, %p3744_p6  ;;  %p3751_p12 = por %p3750_p11, %p3749_p10 }
  0x1b   : > { %p3752_p13 = scmp.lt.u32.totalorder %s3743_s17, %s3993_s12 }
  0x1c   : > { %p3747_p9 = pneg %p3746_p8 }
  0x1d   : > { %p3753_p0 = por %p3752_p13, %p3751_p12 }
  0x1f   : > { %p3754_p1 = pnand %p3753_p0, %p3747_p9 }
  0x21   : > { %3757 = shalt.err (!%p3754_p1)
}
  0x22   : > { %s3758_s28 = scalar_lea.vmem %s3995_s14, 32768  ;;  %s3905_s30 = smov [#allocation6]  }
  0x23   : > { %p3759_p2 = scmp.ne.s32.totalorder %s3995_s14, %s3758_s28  ;;  %s3763_s8 = sshll.u32 %s3905_s30, 4  ;;  %s3764_s8 = int_to_ptr.vmem [resolvable:$false] %s3763_s8 }
  0x24   : > { %s3765_s9 = scalar_lea.vmem %s3764_s8, 65536  ;;  %p3766_p6 = scmp.lt.s32.totalorder %s3995_s14, %s3764_s8 }
  0x25   : > { %p3761_p3 = pnand %p3759_p2, %p4007_p7  ;;  %p3767_p8 = scmp.lt.s32.totalorder %s3765_s9, %s3758_s28 }
  0x27   : > { %p3762_p4 = pneg %p3761_p3  ;;  %p3768_p10 = por %p3767_p8, %p3766_p6 }
  0x29   : > { %p3769_p11 = pnand %p3768_p10, %p3762_p4 }
  0x2b   : > { %3772 = shalt.err (!%p3769_p11)
}
  0x2c   : > { %s4630_s10 = smov 512   ;;  %s3907_s11 = smov 256  }
  0x2d   : > { %s3908_s13 = smov 16   ;;  %s4033_s17 = sadd.s32 4294967295, %s3903_s26  }
  0x2e   : > { %3302 = dma.hbm_to_vmem [thread:$0]  (!%p3997_p5), %s3993_s12, 32768, %s3995_s14, %s4001_s16, %s4630_s10, %s3907_s11, %s3908_s13  }
  0x2f   : > { %p65_p9 = scmp.ne.s32.totalorder %s3895_s24, %s3891_s23  ;;  %p4631_p12 = scmp.eq.s32.totalorder %s4033_s17, 0 }
  0x30   : > { %p2828_p13 = scmp.ge.s32.totalorder %s3903_s26, 1  ;;  %p180_p0 = scmp.lt.s32.totalorder %s3903_s26, 3 }
  0x31   : > { %p4042_p1 = por %p4631_p12, %p65_p9  ;;  %s3909_s12 = smov [#allocation4]  }
  0x32   : > { %p4046_p2 = pnand %p2828_p13, %p180_p0  ;;  %s192_s14 = sshll.u32 %s3909_s12, 4  ;;  %s4052_s14 = int_to_ptr.vmem [resolvable:$true] %s192_s14 }
  0x33   : > { %s4643_s19 = scalar_select %p4042_p1, 1, 0 }
  0x34   : > { %s4644_s20 = scalar_select %p4046_p2, 1, 0 }
  0x35   : > { %p3295_p3 = pneg %p4046_p2  ;;  %s4638_s23 = sshll.u32 %s3986_s7, 2 }
  0x36   : > { %s3116_s21 = sshll.u32 %s3903_s26, 6  ;;  %s231_s8 = scalar_lea.vmem [#allocation8], %s4638_s23 }
  0x37   : > { %p4058_p4 = pnand %p3295_p3, %p4631_p12  ;;  %s4067_s30 = scalar_lea.hbm %s4626_s3, %s3116_s21 }
  0x38   : > { %s239_s9 = sshll.u32 %s231_s8, 4  ;;  %s3773_s12 = scalar_lea.hbm %s4624_s1, 1024  ;;  %s4071_s9 = int_to_ptr.vmem [resolvable:$true] %s239_s9 }
  0x39   : > { %p3774_p6 = scmp.ne.s32.totalorder %s4624_s1, %s3773_s12  ;;  %p3775_p8 = pneg %p4058_p4 }
  0x3a   : > { %p3780_p9 = scmp.lt.u32.totalorder %s3773_s12, %s4624_s1 }
  0x3b   : > { %p3776_p10 = pnand %p3775_p8, %p3774_p6 }
  0x3d   : > { %p3777_p11 = pneg %p3776_p10 }
  0x3f   : > { %p3782_p13 = pnand %p3780_p9, %p3777_p11 }
  0x41   : > { %3785 = shalt.err (!%p3782_p13)
}
  0x42   : > { %s3786_s8 = scalar_lea.vmem %s4052_s14, 1024  ;;  %p3794_p1 = scmp.lt.s32.totalorder %s4052_s14, %s4052_s14 }
  0x43   : > { %p3787_p0 = scmp.ne.s32.totalorder %s4052_s14, %s3786_s8  ;;  %p3795_p2 = scmp.lt.s32.totalorder %s3786_s8, %s3786_s8 }
  0x45   : > { %p3789_p3 = pnand %p3787_p0, %p3775_p8  ;;  %p3796_p5 = por %p3795_p2, %p3794_p1 }
  0x47   : > { %p3790_p12 = pneg %p3789_p3 }
  0x49   : > { %p3797_p7 = pnand %p3796_p5, %p3790_p12 }
  0x4b   : > { %3800 = shalt.err (!%p3797_p7)
}
  0x4c   : > { %s3910_s2 = smov 32   ;;  %s4646_s10 = smov 512  }
  0x4d   : > { %3298 = dma.hbm_to_vmem [thread:$0]  (!%p4058_p4), %s4624_s1, 1024, %s4052_s14, [#allocation5], %s4646_s10, %s4646_s10, %s3910_s2  }
  0x4e   : > { %s3801_s12 = scalar_lea.hbm %s4067_s30, 64  ;;  %p4647_p1 = scmp.ne.s32.totalorder %s4642_s18, 0 }
  0x4f   : > { %p3802_p6 = scmp.ne.s32.totalorder %s4067_s30, %s3801_s12  ;;  %s3806_s22 = scalar_lea.hbm %s4626_s3, 128 }
  0x50   : > { %p3807_p12 = scmp.lt.u32.totalorder %s4067_s30, %s4626_s3  ;;  %p3808_p2 = scmp.lt.u32.totalorder %s3806_s22, %s3801_s12 }
  0x51   : > { %p3804_p5 = pnand %p3802_p6, %p4647_p1  ;;  %p3810_p10 = scmp.lt.u32.totalorder %s3801_s12, %s4067_s30 }
  0x52   : > { %p3809_p8 = por %p3808_p2, %p3807_p12 }
  0x53   : > { %p3805_p7 = pneg %p3804_p5 }
  0x54   : > { %p3811_p11 = por %p3810_p10, %p3809_p8 }
  0x56   : > { %p3812_p9 = pnand %p3811_p11, %p3805_p7 }
  0x58   : > { %3815 = shalt.err (!%p3812_p9)
}
  0x59   : > { %s3816_s14 = scalar_lea.vmem %s4071_s9, 64  ;;  %s3911_s2 = smov [#allocation8]  }
  0x5a   : > { %p3817_p4 = scmp.ne.s32.totalorder %s4071_s9, %s3816_s14  ;;  %s3821_s10 = sshll.u32 %s3911_s2, 4  ;;  %s3822_s10 = int_to_ptr.vmem [resolvable:$false] %s3821_s10 }
  0x5b   : > { %s3823_s23 = scalar_lea.vmem %s3822_s10, 128  ;;  %p3824_p3 = scmp.lt.s32.totalorder %s4071_s9, %s3822_s10 }
  0x5c   : > { %p3819_p13 = pnand %p3817_p4, %p4647_p1  ;;  %p3825_p6 = scmp.lt.s32.totalorder %s3823_s23, %s3816_s14 }
  0x5e   : > { %p3820_p0 = pneg %p3819_p13  ;;  %p3826_p5 = por %p3825_p6, %p3824_p3 }
  0x60   : > { %p3827_p12 = pnand %p3826_p5, %p3820_p0 }
  0x62   : > { %3830 = shalt.err (!%p3827_p12)
}
  0x63   : > { %p4648_p7 = scmp.ne.s32.totalorder %s4641_s15, 0  ;;  %s4123_s12 = scalar_lea.hbm %s4627_s4, %s3116_s21 }
  0x64   : > { %s4649_s27 = sshll.u32 %s3986_s7, 2  ;;  %s247_s8 = scalar_lea.sflag [#allocation10], %s3986_s7 }
  0x65   : > { %3305 = dma.hbm_to_vmem [thread:$0]  (!%p4648_p7), %s4067_s30, 64, %s4071_s9, %s4001_s16  }
  0x66   : > { %s250_s28 = scalar_lea.vmem [#allocation9], %s4649_s27  ;;  %s3831_s14 = scalar_lea.hbm %s4123_s12, 64 }
  0x67   : > { %s258_s22 = sshll.u32 %s250_s28, 4  ;;  %p3832_p2 = scmp.ne.s32.totalorder %s4123_s12, %s3831_s14  ;;  %s259_s22 = int_to_ptr.vmem [resolvable:$true] %s258_s22 }
  0x68   : > { %s3836_s30 = scalar_lea.hbm %s4627_s4, 128  ;;  %p3837_p11 = scmp.lt.u32.totalorder %s4123_s12, %s4627_s4 }
  0x69   : > { %p3834_p8 = pnand %p3832_p2, %p4647_p1  ;;  %p3838_p9 = scmp.lt.u32.totalorder %s3836_s30, %s3831_s14 }
  0x6a   : > { %p3840_p13 = scmp.lt.u32.totalorder %s3831_s14, %s4123_s12 }
  0x6b   : > { %p3835_p10 = pneg %p3834_p8  ;;  %p3839_p4 = por %p3838_p9, %p3837_p11 }
  0x6d   : > { %p3841_p0 = por %p3840_p13, %p3839_p4 }
  0x6f   : > { %p3842_p3 = pnand %p3841_p0, %p3835_p10 }
  0x71   : > { %3845 = shalt.err (!%p3842_p3)
}
  0x72   : > { %s3846_s7 = scalar_lea.vmem %s259_s22, 64  ;;  %s3912_s2 = smov [#allocation9]  }
  0x73   : > { %p3847_p6 = scmp.ne.s32.totalorder %s259_s22, %s3846_s7  ;;  %s3851_s10 = sshll.u32 %s3912_s2, 4  ;;  %s3852_s10 = int_to_ptr.vmem [resolvable:$false] %s3851_s10 }
  0x74   : > { %s3853_s23 = scalar_lea.vmem %s3852_s10, 128  ;;  %p3854_p2 = scmp.lt.s32.totalorder %s259_s22, %s3852_s10 }
  0x75   : > { %p3849_p5 = pnand %p3847_p6, %p4647_p1  ;;  %p3855_p8 = scmp.lt.s32.totalorder %s3853_s23, %s3846_s7 }
  0x77   : > { %p3850_p12 = pneg %p3849_p5  ;;  %p3856_p7 = por %p3855_p8, %p3854_p2 }
  0x79   : > { %p3857_p9 = pnand %p3856_p7, %p3850_p12 }
  0x7b   : > { %3860 = shalt.err (!%p3857_p9)
}
  0x7c   : > { %p4650_p11 = scmp.ne.s32.totalorder %s4641_s15, 0  ;;  %p4651_p10 = scmp.ne.s32.totalorder %s4644_s20, 0 }
  0x7d   : > { %p4652_p4 = scmp.eq.s32.totalorder (!%p4651_p10), %s4033_s17, 0 }
  0x7e   : > { %3308 = dma.hbm_to_vmem [thread:$0]  (!%p4650_p11), %s4123_s12, 64, %s259_s22, %s247_s8  }
  0x7f   : > { %276 = sbr.rel (%p4651_p10) target bundleno = 898 (0x382), region = 40 }
  0x86   : > { %3878 = dma.done.wait (%p4652_p4), [#allocation5], 1024   ;;  %p4653_p1 = pmov %p4652_p4 }
  0x87   : > { %s282_s18 = sand.u32 1, %s4033_s17   ;;  %s284_s11 = sand.u32 1, %s3895_s24  }
  0x88   : > { %3880 = vsyncadd (%p4653_p1), [#allocation5], 4294966272  ;;  %s2842_s13 = sshll.u32 %s284_s11, 11  ;;  %s283_s27 = scalar_lea.sflag [#allocation7], %s282_s18 }
  0x89   : > { %s4153_s28 = scalar_lea.vmem [#allocation6], %s2842_s13  ;;  %p4654_p7 = scmp.ne.s32.totalorder %s4643_s19, 0 }
  0x8b   : > { %3882 = dma.done.wait (%p4654_p7), %s283_s27, 32832  }
  0x8c   : > { %3884 = vsyncadd (%p4654_p7), %s283_s27, 4294934464  ;;  %s2843_s15 = sshll.u32 %s284_s11, 2  ;;  %s301_s12 = scalar_lea.sflag [#allocation10], %s284_s11 }
  0x8d   : > { %s4159_s20 = scalar_lea.vmem [#allocation8], %s2843_s15  ;;  %s4161_s22 = scalar_lea.vmem [#allocation9], %s2843_s15 }
  0x8e   : > { %3886 = dma.done.wait (%p4654_p7), %s301_s12, 64  }
  0x8f   : > { %3888 = vsyncadd (%p4654_p7), %s301_s12, 4294967232  ;;  %v3349_v0 = vld [vmem:[%s4153_s28 + $0x4] ss:$16 sps:$4 sm:$0xff]   ;;  %v3351_v1 = vld [vmem:[%s4153_s28 + $0xc] ss:$16 sps:$4 sm:$0xff]   ;;  %s4315_s19 = sld [smem:[#allocation3]] }
  0x90   : > { %1944 = vmatprep.subr.bf16.mxu0 %v3349_v0  ;;  %v3353_v2 = vld [vmem:[%s4153_s28] ss:$16 sps:$4 sm:$0xff]   ;;  %v3354_v3 = vld [vmem:[%s4153_s28 + $0x8] ss:$16 sps:$4 sm:$0xff]   ;;  %2116 = vmatprep.subr.bf16.mxu1 %v3351_v1  ;;  %v3355_v4 = vld [vmem:[%s4153_s28 + $0x24] ss:$16 sps:$4 sm:$0xff]  }
  0x91   : > { %1945 = vmatpush1.bf16.msra.mxu0 %v3353_v2  ;;  %2117 = vmatpush1.bf16.msra.mxu1 %v3354_v3  ;;  %v3357_v5 = vld [vmem:[%s4153_s28 + $0x2c] ss:$16 sps:$4 sm:$0xff]   ;;  %v3359_v6 = vld [vmem:[%s4153_s28 + $0x20] ss:$16 sps:$4 sm:$0xff]   ;;  %v3360_v7 = vld [vmem:[%s4153_s28 + $0x28] ss:$16 sps:$4 sm:$0xff]  }
  0x92   : > { %1946 = vmatprep.subr.bf16.mxu0 %v3355_v4  ;;  %2118 = vmatprep.subr.bf16.mxu1 %v3357_v5  ;;  %v3361_v8 = vld [vmem:[%s4153_s28 + $0x44] ss:$16 sps:$4 sm:$0xff]   ;;  %v3363_v9 = vld [vmem:[%s4153_s28 + $0x4c] ss:$16 sps:$4 sm:$0xff]   ;;  %v3365_v10 = vld [vmem:[%s4153_s28 + $0x40] ss:$16 sps:$4 sm:$0xff]  }
  0x93   : > { %v3366_v11 = vld [vmem:[%s4153_s28 + $0x48] ss:$16 sps:$4 sm:$0xff]   ;;  %v3367_v12 = vld [vmem:[%s4153_s28 + $0x64] ss:$16 sps:$4 sm:$0xff]   ;;  %v3369_v13 = vld [vmem:[%s4153_s28 + $0x6c] ss:$16 sps:$4 sm:$0xff]  }
  0x94   : > { %v3371_v14 = vld [vmem:[%s4153_s28 + $0x60] ss:$16 sps:$4 sm:$0xff]   ;;  %v3372_v15 = vld [vmem:[%s4153_s28 + $0x68] ss:$16 sps:$4 sm:$0xff]   ;;  %v3373_v16 = vld [vmem:[%s4153_s28 + $0x84] ss:$16 sps:$4 sm:$0xff]  }
  0x95   : > { %1947 = vmatpush1.bf16.msra.mxu0 %v3359_v6  ;;  %2119 = vmatpush1.bf16.msra.mxu1 %v3360_v7  ;;  %v3375_v17 = vld [vmem:[%s4153_s28 + $0x8c] ss:$16 sps:$4 sm:$0xff]   ;;  %v3377_v18 = vld [vmem:[%s4153_s28 + $0x80] ss:$16 sps:$4 sm:$0xff]   ;;  %v3378_v19 = vld [vmem:[%s4153_s28 + $0x88] ss:$16 sps:$4 sm:$0xff]   ;;  %s2355_s8 = scvt.s32.f32 %s4315_s19 }
  0x96   : > { %1948 = vmatprep.subr.bf16.mxu0 %v3361_v8  ;;  %2120 = vmatprep.subr.bf16.mxu1 %v3363_v9  ;;  %v3379_v20 = vld [vmem:[%s4153_s28 + $0xa4] ss:$16 sps:$4 sm:$0xff]   ;;  %v3381_v21 = vld [vmem:[%s4153_s28 + $0xac] ss:$16 sps:$4 sm:$0xff]   ;;  %v3383_v22 = vld [vmem:[%s4153_s28 + $0xa0] ss:$16 sps:$4 sm:$0xff]  }
  0x97   : > { %v3384_v23 = vld [vmem:[%s4153_s28 + $0xa8] ss:$16 sps:$4 sm:$0xff]   ;;  %v3385_v24 = vld [vmem:[%s4153_s28 + $0xc4] ss:$16 sps:$4 sm:$0xff]   ;;  %v3387_v25 = vld [vmem:[%s4153_s28 + $0xcc] ss:$16 sps:$4 sm:$0xff]  }
  0x98   : > { %v3389_v26 = vld [vmem:[%s4153_s28 + $0xc0] ss:$16 sps:$4 sm:$0xff]   ;;  %v3390_v27 = vld [vmem:[%s4153_s28 + $0xc8] ss:$16 sps:$4 sm:$0xff]   ;;  %v3391_v28 = vld [vmem:[%s4153_s28 + $0xe4] ss:$16 sps:$4 sm:$0xff]  }
  0x99   : > { %1949 = vmatpush1.bf16.msra.mxu0 %v3365_v10  ;;  %2121 = vmatpush1.bf16.msra.mxu1 %v3366_v11  ;;  %v3393_v29 = vld [vmem:[%s4153_s28 + $0xec] ss:$16 sps:$4 sm:$0xff]   ;;  %v3395_v30 = vld [vmem:[%s4153_s28 + $0xe0] ss:$16 sps:$4 sm:$0xff]   ;;  %v3396_v31 = vld [vmem:[%s4153_s28 + $0xe8] ss:$16 sps:$4 sm:$0xff]  }
  0x9a   : > { %1950 = vmatprep.subr.bf16.mxu0 %v3367_v12  ;;  %2122 = vmatprep.subr.bf16.mxu1 %v3369_v13  ;;  %v3397_v32 = vld [vmem:[%s4153_s28 + $0x104] ss:$16 sps:$4 sm:$0xff]   ;;  %v3399_v33 = vld [vmem:[%s4153_s28 + $0x10c] ss:$16 sps:$4 sm:$0xff]   ;;  %v3401_v34 = vld [vmem:[%s4153_s28 + $0x100] ss:$16 sps:$4 sm:$0xff]  }
  0x9b   : > { %v3402_v35 = vld [vmem:[%s4153_s28 + $0x108] ss:$16 sps:$4 sm:$0xff]   ;;  %v3403_v36 = vld [vmem:[%s4153_s28 + $0x124] ss:$16 sps:$4 sm:$0xff]   ;;  %v3405_v37 = vld [vmem:[%s4153_s28 + $0x12c] ss:$16 sps:$4 sm:$0xff]  }
  0x9c   : > { %v3407_v38 = vld [vmem:[%s4153_s28 + $0x120] ss:$16 sps:$4 sm:$0xff]   ;;  %v3408_v39 = vld [vmem:[%s4153_s28 + $0x128] ss:$16 sps:$4 sm:$0xff]   ;;  %v3409_v40 = vld [vmem:[%s4153_s28 + $0x144] ss:$16 sps:$4 sm:$0xff]  }
  0x9d   : > { %1951 = vmatpush1.bf16.msra.mxu0 %v3371_v14  ;;  %2123 = vmatpush1.bf16.msra.mxu1 %v3372_v15  ;;  %v3411_v41 = vld [vmem:[%s4153_s28 + $0x14c] ss:$16 sps:$4 sm:$0xff]   ;;  %v3413_v42 = vld [vmem:[%s4153_s28 + $0x140] ss:$16 sps:$4 sm:$0xff]   ;;  %v3414_v43 = vld [vmem:[%s4153_s28 + $0x148] ss:$16 sps:$4 sm:$0xff]  }
  0x9e   : > { %1952 = vmatprep.subr.bf16.mxu0 %v3373_v16  ;;  %2124 = vmatprep.subr.bf16.mxu1 %v3375_v17  ;;  %v3415_v44 = vld [vmem:[%s4153_s28 + $0x164] ss:$16 sps:$4 sm:$0xff]   ;;  %v3417_v45 = vld [vmem:[%s4153_s28 + $0x16c] ss:$16 sps:$4 sm:$0xff]   ;;  %v3419_v48 = vld [vmem:[%s4153_s28 + $0x160] ss:$16 sps:$4 sm:$0xff]  }
  0x9f   : > { %v360_v46 = vld [vmem:[#allocation4] sm:$0xff]  ;;  %v3420_v49 = vld [vmem:[%s4153_s28 + $0x168] ss:$16 sps:$4 sm:$0xff]   ;;  %v3423_v52 = vld [vmem:[%s4153_s28 + $0x18c] ss:$16 sps:$4 sm:$0xff]   ;;  %s2845_s14 = sshll.u32 %s4033_s17, 6 }
  0xa0   : > { %v364_v47 = vld [vmem:[#allocation4 + $0x20] sm:$0xff]  ;;  %v3426_v54 = vld [vmem:[%s4153_s28 + $0x188] ss:$16 sps:$4 sm:$0xff]   ;;  %v3429_v56 = vld [vmem:[%s4153_s28 + $0x1ac] ss:$16 sps:$4 sm:$0xff]   ;;  %p350_p13 = scmp.lt.s32.totalorder %s2845_s14, 127 }
  0xa1   : > { %1953 = vmatpush1.bf16.msra.mxu0 %v3377_v18  ;;  %2125 = vmatpush1.bf16.msra.mxu1 %v3378_v19  ;;  %v2850_v50 = vcombine.high %v360_v46, %v364_v47  ;;  %v3421_v51 = vld [vmem:[%s4153_s28 + $0x184] ss:$16 sps:$4 sm:$0xff]   ;;  %v3425_v53 = vld [vmem:[%s4153_s28 + $0x180] ss:$16 sps:$4 sm:$0xff]   ;;  %v3432_v58 = vld [vmem:[%s4153_s28 + $0x1a8] ss:$16 sps:$4 sm:$0xff]   ;;  %v2849_v5 = vcombine.low %v360_v46, %v364_v47 }
  0xa2   : > { %1954 = vmatprep.subr.bf16.mxu0 %v3379_v20  ;;  %2126 = vmatprep.subr.bf16.mxu1 %v3381_v21  ;;  %v3427_v55 = vld [vmem:[%s4153_s28 + $0x1a4] ss:$16 sps:$4 sm:$0xff]   ;;  %v3431_v57 = vld [vmem:[%s4153_s28 + $0x1a0] ss:$16 sps:$4 sm:$0xff]   ;;  %v3435_v60 = vld [vmem:[%s4153_s28 + $0x1cc] ss:$16 sps:$4 sm:$0xff]  }
  0xa3   : > { %1976 = vmatprep.mubr.bf16.mxu0 %v2850_v50  ;;  %2148 = vmatprep.mubr.bf16.mxu1 %v2850_v50  ;;  %v3433_v59 = vld [vmem:[%s4153_s28 + $0x1c4] ss:$16 sps:$4 sm:$0xff]   ;;  %v3437_v61 = vld [vmem:[%s4153_s28 + $0x1c0] ss:$16 sps:$4 sm:$0xff]   ;;  %v3438_v62 = vld [vmem:[%s4153_s28 + $0x1c8] ss:$16 sps:$4 sm:$0xff]  }
  0xa4   : > { %v3439_v63 = vld [vmem:[%s4153_s28 + $0x1e4] ss:$16 sps:$4 sm:$0xff]   ;;  %v3441_v0 = vld [vmem:[%s4153_s28 + $0x1ec] ss:$16 sps:$4 sm:$0xff]   ;;  %v3443_v1 = vld [vmem:[%s4153_s28 + $0x1e0] ss:$16 sps:$4 sm:$0xff]  }
  0xa5   : > { %1955 = vmatpush1.bf16.msra.mxu0 %v3383_v22  ;;  %2127 = vmatpush1.bf16.msra.mxu1 %v3384_v23  ;;  %v3444_v2 = vld [vmem:[%s4153_s28 + $0x1e8] ss:$16 sps:$4 sm:$0xff]   ;;  %v3447_v3 = vld [vmem:[%s4153_s28 + $0x204] ss:$16 sps:$4 sm:$0xff]   ;;  %v3450_v4 = vld [vmem:[%s4153_s28 + $0x20c] ss:$16 sps:$4 sm:$0xff]  }
  0xa6   : > { %1956 = vmatprep.subr.bf16.mxu0 %v3385_v24  ;;  %2128 = vmatprep.subr.bf16.mxu1 %v3387_v25  ;;  %v3445_v6 = vld [vmem:[%s4153_s28 + $0x200] ss:$16 sps:$4 sm:$0xff]   ;;  %v3448_v7 = vld [vmem:[%s4153_s28 + $0x208] ss:$16 sps:$4 sm:$0xff]   ;;  %v3453_v8 = vld [vmem:[%s4153_s28 + $0x224] ss:$16 sps:$4 sm:$0xff]  }
  0xa7   : > { %v3456_v9 = vld [vmem:[%s4153_s28 + $0x22c] ss:$16 sps:$4 sm:$0xff]   ;;  %v3451_v10 = vld [vmem:[%s4153_s28 + $0x220] ss:$16 sps:$4 sm:$0xff]   ;;  %v3454_v11 = vld [vmem:[%s4153_s28 + $0x228] ss:$16 sps:$4 sm:$0xff]  }
  0xa8   : > { %v3459_v12 = vld [vmem:[%s4153_s28 + $0x244] ss:$16 sps:$4 sm:$0xff]   ;;  %v3462_v13 = vld [vmem:[%s4153_s28 + $0x24c] ss:$16 sps:$4 sm:$0xff]   ;;  %v3457_v14 = vld [vmem:[%s4153_s28 + $0x240] ss:$16 sps:$4 sm:$0xff]  }
  0xa9   : > { %1957 = vmatpush1.bf16.msra.mxu0 %v3389_v26  ;;  %2129 = vmatpush1.bf16.msra.mxu1 %v3390_v27  ;;  %v3460_v15 = vld [vmem:[%s4153_s28 + $0x248] ss:$16 sps:$4 sm:$0xff]   ;;  %v3465_v16 = vld [vmem:[%s4153_s28 + $0x264] ss:$16 sps:$4 sm:$0xff]   ;;  %v3468_v17 = vld [vmem:[%s4153_s28 + $0x26c] ss:$16 sps:$4 sm:$0xff]  }
  0xaa   : > { %1958 = vmatprep.subr.bf16.mxu0 %v3391_v28  ;;  %2130 = vmatprep.subr.bf16.mxu1 %v3393_v29  ;;  %v3463_v18 = vld [vmem:[%s4153_s28 + $0x260] ss:$16 sps:$4 sm:$0xff]   ;;  %v3466_v19 = vld [vmem:[%s4153_s28 + $0x268] ss:$16 sps:$4 sm:$0xff]   ;;  %v3471_v20 = vld [vmem:[%s4153_s28 + $0x284] ss:$16 sps:$4 sm:$0xff]  }
  0xab   : > { %v3474_v21 = vld [vmem:[%s4153_s28 + $0x28c] ss:$16 sps:$4 sm:$0xff]   ;;  %v3469_v22 = vld [vmem:[%s4153_s28 + $0x280] ss:$16 sps:$4 sm:$0xff]   ;;  %v3472_v23 = vld [vmem:[%s4153_s28 + $0x288] ss:$16 sps:$4 sm:$0xff]  }
  0xac   : > { %v3477_v24 = vld [vmem:[%s4153_s28 + $0x2a4] ss:$16 sps:$4 sm:$0xff]   ;;  %v3480_v25 = vld [vmem:[%s4153_s28 + $0x2ac] ss:$16 sps:$4 sm:$0xff]   ;;  %v3475_v26 = vld [vmem:[%s4153_s28 + $0x2a0] ss:$16 sps:$4 sm:$0xff]  }
  0xad   : > { %1959 = vmatpush1.bf16.msra.mxu0 %v3395_v30  ;;  %2131 = vmatpush1.bf16.msra.mxu1 %v3396_v31  ;;  %v3478_v27 = vld [vmem:[%s4153_s28 + $0x2a8] ss:$16 sps:$4 sm:$0xff]   ;;  %v3483_v28 = vld [vmem:[%s4153_s28 + $0x2c4] ss:$16 sps:$4 sm:$0xff]   ;;  %v3486_v29 = vld [vmem:[%s4153_s28 + $0x2cc] ss:$16 sps:$4 sm:$0xff]  }
  0xae   : > { %1960 = vmatprep.subr.bf16.mxu0 %v3397_v32  ;;  %2132 = vmatprep.subr.bf16.mxu1 %v3399_v33  ;;  %v4257_v30 = vld [vmem:[#allocation4 + $0x8] sm:$0xff]  ;;  %v3481_v32 = vld [vmem:[%s4153_s28 + $0x2c0] ss:$16 sps:$4 sm:$0xff]   ;;  %v3507_v47 = vld [vmem:[%s4153_s28 + $0x344] ss:$16 sps:$4 sm:$0xff]   ;;  %s4664_s14 = smov (!%p350_p13, %s2845_s14), 127 }
  0xaf   : > { %v4259_v31 = vld [vmem:[#allocation4 + $0x28] sm:$0xff]  ;;  %s2846_s26 = sshll.u32 %s4664_s14, 3  ;;  %p355_p0 = scmp.lt.s32.totalorder %s4033_s17, 1  ;;  %vm2690_vm2 = vcmask 64512  }
  0xb0   : > { %v3484_v33 = vld [vmem:[%s4153_s28 + $0x2c8] ss:$16 sps:$4 sm:$0xff]   ;;  %s4454_s21 = scalar_lea.vmem %s4628_s5, %s2846_s26 }
  0xb1   : > { %1961 = vmatpush1.bf16.msra.mxu0 %v3401_v34  ;;  %2133 = vmatpush1.bf16.msra.mxu1 %v3402_v35  ;;  %v2852_v34 = vcombine.high %v4257_v30, %v4259_v31  ;;  %v3489_v35 = vld [vmem:[%s4153_s28 + $0x2e4] ss:$16 sps:$4 sm:$0xff]   ;;  %v3502_v46 = vld [vmem:[%s4153_s28 + $0x328] ss:$16 sps:$4 sm:$0xff]   ;;  %s4666_s17 = smov (!%p355_p0, %s4033_s17), 1 }
  0xb2   : > { %1962 = vmatprep.subr.bf16.mxu0 %v3403_v36  ;;  %2134 = vmatprep.subr.bf16.mxu1 %v3405_v37  ;;  %v3492_v36 = vld [vmem:[%s4153_s28 + $0x2ec] ss:$16 sps:$4 sm:$0xff]   ;;  %v3487_v37 = vld [vmem:[%s4153_s28 + $0x2e0] ss:$16 sps:$4 sm:$0xff]   ;;  %v3508_v50 = vld [vmem:[%s4153_s28 + $0x348] ss:$16 sps:$4 sm:$0xff]  }
  0xb3   : > { %s3118_s7 = sshll.u32 %s4666_s17, 4 }
  0xb4   : > { %s359_s23 = scalar_lea.vmem %s4629_s6, %s3118_s7 }
  0xb5   : > { %1963 = vmatpush1.bf16.msra.mxu0 %v3407_v38  ;;  %2135 = vmatpush1.bf16.msra.mxu1 %v3408_v39  ;;  %v3490_v38 = vld [vmem:[%s4153_s28 + $0x2e8] ss:$16 sps:$4 sm:$0xff]   ;;  %v3495_v39 = vld [vmem:[%s4153_s28 + $0x304] ss:$16 sps:$4 sm:$0xff]  }
  0xb6   : > { %1964 = vmatprep.subr.bf16.mxu0 %v3409_v40  ;;  %2136 = vmatprep.subr.bf16.mxu1 %v3411_v41  ;;  %v3498_v40 = vld [vmem:[%s4153_s28 + $0x30c] ss:$16 sps:$4 sm:$0xff]   ;;  %v3493_v41 = vld [vmem:[%s4153_s28 + $0x300] ss:$16 sps:$4 sm:$0xff]  }
  0xb9   : > { %1965 = vmatpush1.bf16.msra.mxu0 %v3413_v42  ;;  %2137 = vmatpush1.bf16.msra.mxu1 %v3414_v43  ;;  %v3496_v42 = vld [vmem:[%s4153_s28 + $0x308] ss:$16 sps:$4 sm:$0xff]   ;;  %v3501_v43 = vld [vmem:[%s4153_s28 + $0x324] ss:$16 sps:$4 sm:$0xff]  }
  0xba   : > { %1966 = vmatprep.subr.bf16.mxu0 %v3415_v44  ;;  %2138 = vmatprep.subr.bf16.mxu1 %v3417_v45  ;;  %v3504_v44 = vld [vmem:[%s4153_s28 + $0x32c] ss:$16 sps:$4 sm:$0xff]   ;;  %v3499_v45 = vld [vmem:[%s4153_s28 + $0x320] ss:$16 sps:$4 sm:$0xff]  }
  0xbd   : > { %1967 = vmatpush1.bf16.msra.mxu0 %v3419_v48  ;;  %2139 = vmatpush1.bf16.msra.mxu1 %v3420_v49  ;;  %v3510_v48 = vld [vmem:[%s4153_s28 + $0x34c] ss:$16 sps:$4 sm:$0xff]   ;;  %v3505_v49 = vld [vmem:[%s4153_s28 + $0x340] ss:$16 sps:$4 sm:$0xff]  }
  0xbe   : > { %1968 = vmatprep.subr.bf16.mxu0 %v3421_v51  ;;  %2140 = vmatprep.subr.bf16.mxu1 %v3423_v52  ;;  %v3513_v51 = vld [vmem:[%s4153_s28 + $0x364] ss:$16 sps:$4 sm:$0xff]   ;;  %v3516_v52 = vld [vmem:[%s4153_s28 + $0x36c] ss:$16 sps:$4 sm:$0xff]  }
  0xc1   : > { %1969 = vmatpush1.bf16.msra.mxu0 %v3425_v53  ;;  %2141 = vmatpush1.bf16.msra.mxu1 %v3426_v54  ;;  %v3511_v53 = vld [vmem:[%s4153_s28 + $0x360] ss:$16 sps:$4 sm:$0xff]   ;;  %v3514_v54 = vld [vmem:[%s4153_s28 + $0x368] ss:$16 sps:$4 sm:$0xff]  }
  0xc2   : > { %1970 = vmatprep.subr.bf16.mxu0 %v3427_v55  ;;  %2142 = vmatprep.subr.bf16.mxu1 %v3429_v56  ;;  %v3519_v55 = vld [vmem:[%s4153_s28 + $0x384] ss:$16 sps:$4 sm:$0xff]   ;;  %v3522_v56 = vld [vmem:[%s4153_s28 + $0x38c] ss:$16 sps:$4 sm:$0xff]  }
  0xc5   : > { %1971 = vmatpush1.bf16.msra.mxu0 %v3431_v57  ;;  %2143 = vmatpush1.bf16.msra.mxu1 %v3432_v58  ;;  %v3517_v57 = vld [vmem:[%s4153_s28 + $0x380] ss:$16 sps:$4 sm:$0xff]   ;;  %v3520_v58 = vld [vmem:[%s4153_s28 + $0x388] ss:$16 sps:$4 sm:$0xff]  }
  0xc6   : > { %1972 = vmatprep.subr.bf16.mxu0 %v3433_v59  ;;  %2144 = vmatprep.subr.bf16.mxu1 %v3435_v60  ;;  %v3525_v59 = vld [vmem:[%s4153_s28 + $0x3a4] ss:$16 sps:$4 sm:$0xff]   ;;  %v3528_v60 = vld [vmem:[%s4153_s28 + $0x3ac] ss:$16 sps:$4 sm:$0xff]  }
  0xc9   : > { %1973 = vmatpush1.bf16.msra.mxu0 %v3437_v61  ;;  %2145 = vmatpush1.bf16.msra.mxu1 %v3438_v62  ;;  %v3523_v61 = vld [vmem:[%s4153_s28 + $0x3a0] ss:$16 sps:$4 sm:$0xff]   ;;  %v3526_v62 = vld [vmem:[%s4153_s28 + $0x3a8] ss:$16 sps:$4 sm:$0xff]  }
  0xca   : > { %1974 = vmatprep.subr.bf16.mxu0 %v3439_v63  ;;  %2146 = vmatprep.subr.bf16.mxu1 %v3441_v0  ;;  %v3531_v63 = vld [vmem:[%s4153_s28 + $0x3c4] ss:$16 sps:$4 sm:$0xff]   ;;  %v3534_v0 = vld [vmem:[%s4153_s28 + $0x3cc] ss:$16 sps:$4 sm:$0xff]  }
  0xcd   : > { %1975 = vmatpush1.bf16.msra.mxu0 %v3443_v1  ;;  %2147 = vmatpush1.bf16.msra.mxu1 %v3444_v2  ;;  %v3529_v1 = vld [vmem:[%s4153_s28 + $0x3c0] ss:$16 sps:$4 sm:$0xff]   ;;  %v3532_v2 = vld [vmem:[%s4153_s28 + $0x3c8] ss:$16 sps:$4 sm:$0xff]  }
  0xce   : > { %1987 = vmatprep.subr.bf16.mxu0 %v3447_v3  ;;  %2159 = vmatprep.subr.bf16.mxu1 %v3450_v4  ;;  %v3537_v3 = vld [vmem:[%s4153_s28 + $0x3e4] ss:$16 sps:$4 sm:$0xff]   ;;  %v3540_v4 = vld [vmem:[%s4153_s28 + $0x3ec] ss:$16 sps:$4 sm:$0xff]  }
  0xd0   : > { %1977 = vmatmul.mubr.bf16.vlgmr.msra.gmra.mrb[0].mxu0 %v2849_v5  ;;  %2149 = vmatmul.mubr.bf16.vlgmr.msra.gmra.mrb[0].mxu1 %v2849_v5  ;;  %v3535_v5 = vld [vmem:[%s4153_s28 + $0x3e0] ss:$16 sps:$4 sm:$0xff]  }
  0xd1   : > { %1988 = vmatpush1.bf16.msra.mxu0 %v3445_v6  ;;  %2160 = vmatpush1.bf16.msra.mxu1 %v3448_v7  ;;  %v3538_v6 = vld [vmem:[%s4153_s28 + $0x3e8] ss:$16 sps:$4 sm:$0xff]   ;;  %v3543_v7 = vld [vmem:[%s4153_s28 + $0x404] ss:$16 sps:$4 sm:$0xff]  }
  0xd2   : > { %1989 = vmatprep.subr.bf16.mxu0 %v3453_v8  ;;  %2161 = vmatprep.subr.bf16.mxu1 %v3456_v9  ;;  %v3546_v8 = vld [vmem:[%s4153_s28 + $0x40c] ss:$16 sps:$4 sm:$0xff]   ;;  %v2851_v9 = vcombine.low %v4257_v30, %v4259_v31  ;;  %v3565_v30 = vld [vmem:[%s4153_s28 + $0x480] ss:$16 sps:$4 sm:$0xff]   ;;  %v3568_v31 = vld [vmem:[%s4153_s28 + $0x488] ss:$16 sps:$4 sm:$0xff]  }
  0xd3   : > { %2019 = vmatprep.mubr.bf16.mxu0 %v2852_v34  ;;  %2191 = vmatprep.mubr.bf16.mxu1 %v2852_v34  ;;  %v3571_v34 = vld [vmem:[%s4153_s28 + $0x4a0] ss:$16 sps:$4 sm:$0xff]  }
  0xd5   : > { %1990 = vmatpush1.bf16.msra.mxu0 %v3451_v10  ;;  %2162 = vmatpush1.bf16.msra.mxu1 %v3454_v11  ;;  %v3541_v10 = vld [vmem:[%s4153_s28 + $0x400] ss:$16 sps:$4 sm:$0xff]   ;;  %v3544_v11 = vld [vmem:[%s4153_s28 + $0x408] ss:$16 sps:$4 sm:$0xff]  }
  0xd6   : > { %1991 = vmatprep.subr.bf16.mxu0 %v3459_v12  ;;  %2163 = vmatprep.subr.bf16.mxu1 %v3462_v13  ;;  %v3549_v12 = vld [vmem:[%s4153_s28 + $0x424] ss:$16 sps:$4 sm:$0xff]   ;;  %v3552_v13 = vld [vmem:[%s4153_s28 + $0x42c] ss:$16 sps:$4 sm:$0xff]  }
  0xd9   : > { %1992 = vmatpush1.bf16.msra.mxu0 %v3457_v14  ;;  %2164 = vmatpush1.bf16.msra.mxu1 %v3460_v15  ;;  %v4309_v14 = vld [vmem:[#allocation4 + $0x10] sm:$0xff] }
  0xda   : > { %1993 = vmatprep.subr.bf16.mxu0 %v3465_v16  ;;  %2165 = vmatprep.subr.bf16.mxu1 %v3468_v17  ;;  %v4311_v15 = vld [vmem:[#allocation4 + $0x30] sm:$0xff] }
  0xdb   : > { %v2854_v16 = vcombine.high %v4309_v14, %v4311_v15  ;;  %v3547_v17 = vld [vmem:[%s4153_s28 + $0x420] ss:$16 sps:$4 sm:$0xff]  }
  0xdd   : > { %1994 = vmatpush1.bf16.msra.mxu0 %v3463_v18  ;;  %2166 = vmatpush1.bf16.msra.mxu1 %v3466_v19  ;;  %v3550_v18 = vld [vmem:[%s4153_s28 + $0x428] ss:$16 sps:$4 sm:$0xff]   ;;  %v3555_v19 = vld [vmem:[%s4153_s28 + $0x444] ss:$16 sps:$4 sm:$0xff]  }
  0xde   : > { %1995 = vmatprep.subr.bf16.mxu0 %v3471_v20  ;;  %2167 = vmatprep.subr.bf16.mxu1 %v3474_v21  ;;  %v3558_v20 = vld [vmem:[%s4153_s28 + $0x44c] ss:$16 sps:$4 sm:$0xff]   ;;  %v3553_v21 = vld [vmem:[%s4153_s28 + $0x440] ss:$16 sps:$4 sm:$0xff]  }
  0xe1   : > { %1996 = vmatpush1.bf16.msra.mxu0 %v3469_v22  ;;  %2168 = vmatpush1.bf16.msra.mxu1 %v3472_v23  ;;  %v3556_v22 = vld [vmem:[%s4153_s28 + $0x448] ss:$16 sps:$4 sm:$0xff]   ;;  %v3561_v23 = vld [vmem:[%s4153_s28 + $0x464] ss:$16 sps:$4 sm:$0xff]  }
  0xe2   : > { %1997 = vmatprep.subr.bf16.mxu0 %v3477_v24  ;;  %2169 = vmatprep.subr.bf16.mxu1 %v3480_v25  ;;  %v3564_v24 = vld [vmem:[%s4153_s28 + $0x46c] ss:$16 sps:$4 sm:$0xff]   ;;  %v2356_v25 = vstv %s2355_s8 }
  0xe3   : > { %3733 = vrcp.f32 %v2356_v25  ;;  %v3651_v25 = vld [vmem:[%s4153_s28 + $0x644] ss:$16 sps:$4 sm:$0xff]  }
  0xe5   : > { %1998 = vmatpush1.bf16.msra.mxu0 %v3475_v26  ;;  %2170 = vmatpush1.bf16.msra.mxu1 %v3478_v27  ;;  %v3559_v26 = vld [vmem:[%s4153_s28 + $0x460] ss:$16 sps:$4 sm:$0xff]   ;;  %v3562_v27 = vld [vmem:[%s4153_s28 + $0x468] ss:$16 sps:$4 sm:$0xff]  }
  0xe6   : > { %1999 = vmatprep.subr.bf16.mxu0 %v3483_v28  ;;  %2171 = vmatprep.subr.bf16.mxu1 %v3486_v29  ;;  %v3567_v28 = vld [vmem:[%s4153_s28 + $0x484] ss:$16 sps:$4 sm:$0xff]   ;;  %v3570_v29 = vld [vmem:[%s4153_s28 + $0x48c] ss:$16 sps:$4 sm:$0xff]  }
  0xe9   : > { %2000 = vmatpush1.bf16.msra.mxu0 %v3481_v32  ;;  %2172 = vmatpush1.bf16.msra.mxu1 %v3484_v33  ;;  %v3573_v32 = vld [vmem:[%s4153_s28 + $0x4a4] ss:$16 sps:$4 sm:$0xff]   ;;  %v3576_v33 = vld [vmem:[%s4153_s28 + $0x4ac] ss:$16 sps:$4 sm:$0xff]  }
  0xea   : > { %2001 = vmatprep.subr.bf16.mxu0 %v3489_v35  ;;  %2173 = vmatprep.subr.bf16.mxu1 %v3492_v36  ;;  %v3574_v35 = vld [vmem:[%s4153_s28 + $0x4a8] ss:$16 sps:$4 sm:$0xff]   ;;  %v3579_v36 = vld [vmem:[%s4153_s28 + $0x4c4] ss:$16 sps:$4 sm:$0xff]  }
  0xed   : > { %2002 = vmatpush1.bf16.msra.mxu0 %v3487_v37  ;;  %2174 = vmatpush1.bf16.msra.mxu1 %v3490_v38  ;;  %v3582_v37 = vld [vmem:[%s4153_s28 + $0x4cc] ss:$16 sps:$4 sm:$0xff]   ;;  %v3734_v38 = vpop.eup %3733 }
  0xee   : > { %2003 = vmatprep.subr.bf16.mxu0 %v3495_v39  ;;  %2175 = vmatprep.subr.bf16.mxu1 %v3498_v40  ;;  %3283 = vpush %v3734_v38  ;;  %v3577_v39 = vld [vmem:[%s4153_s28 + $0x4c0] ss:$16 sps:$4 sm:$0xff]   ;;  %v3580_v40 = vld [vmem:[%s4153_s28 + $0x4c8] ss:$16 sps:$4 sm:$0xff]   ;;  %v3672_v38 = vld [vmem:[%s4153_s28 + $0x6ac] ss:$16 sps:$4 sm:$0xff]  }
  0xf1   : > { %2004 = vmatpush1.bf16.msra.mxu0 %v3493_v41  ;;  %2176 = vmatpush1.bf16.msra.mxu1 %v3496_v42  ;;  %v3585_v41 = vld [vmem:[%s4153_s28 + $0x4e4] ss:$16 sps:$4 sm:$0xff]   ;;  %v3588_v42 = vld [vmem:[%s4153_s28 + $0x4ec] ss:$16 sps:$4 sm:$0xff]  }
  0xf2   : > { %2005 = vmatprep.subr.bf16.mxu0 %v3501_v43  ;;  %2177 = vmatprep.subr.bf16.mxu1 %v3504_v44  ;;  %v3583_v43 = vld [vmem:[%s4153_s28 + $0x4e0] ss:$16 sps:$4 sm:$0xff]   ;;  %v3586_v44 = vld [vmem:[%s4153_s28 + $0x4e8] ss:$16 sps:$4 sm:$0xff]  }
  0xf5   : > { %2006 = vmatpush1.bf16.msra.mxu0 %v3499_v45  ;;  %2178 = vmatpush1.bf16.msra.mxu1 %v3502_v46  ;;  %v3591_v45 = vld [vmem:[%s4153_s28 + $0x504] ss:$16 sps:$4 sm:$0xff]   ;;  %v3594_v46 = vld [vmem:[%s4153_s28 + $0x50c] ss:$16 sps:$4 sm:$0xff]  }
  0xf6   : > { %2007 = vmatprep.subr.bf16.mxu0 %v3507_v47  ;;  %2179 = vmatprep.subr.bf16.mxu1 %v3510_v48  ;;  %v3589_v47 = vld [vmem:[%s4153_s28 + $0x500] ss:$16 sps:$4 sm:$0xff]   ;;  %v3592_v48 = vld [vmem:[%s4153_s28 + $0x508] ss:$16 sps:$4 sm:$0xff]  }
  0xf9   : > { %2008 = vmatpush1.bf16.msra.mxu0 %v3505_v49  ;;  %2180 = vmatpush1.bf16.msra.mxu1 %v3508_v50  ;;  %v3597_v49 = vld [vmem:[%s4153_s28 + $0x524] ss:$16 sps:$4 sm:$0xff]   ;;  %v3600_v50 = vld [vmem:[%s4153_s28 + $0x52c] ss:$16 sps:$4 sm:$0xff]  }
  0xfa   : > { %2009 = vmatprep.subr.bf16.mxu0 %v3513_v51  ;;  %2181 = vmatprep.subr.bf16.mxu1 %v3516_v52  ;;  %v3595_v51 = vld [vmem:[%s4153_s28 + $0x520] ss:$16 sps:$4 sm:$0xff]   ;;  %v3598_v52 = vld [vmem:[%s4153_s28 + $0x528] ss:$16 sps:$4 sm:$0xff]  }
  0xfd   : > { %2010 = vmatpush1.bf16.msra.mxu0 %v3511_v53  ;;  %2182 = vmatpush1.bf16.msra.mxu1 %v3514_v54  ;;  %v3603_v53 = vld [vmem:[%s4153_s28 + $0x544] ss:$16 sps:$4 sm:$0xff]   ;;  %v3606_v54 = vld [vmem:[%s4153_s28 + $0x54c] ss:$16 sps:$4 sm:$0xff]  }
  0xfe   : > { %2011 = vmatprep.subr.bf16.mxu0 %v3519_v55  ;;  %2183 = vmatprep.subr.bf16.mxu1 %v3522_v56  ;;  %v3601_v55 = vld [vmem:[%s4153_s28 + $0x540] ss:$16 sps:$4 sm:$0xff]   ;;  %v3604_v56 = vld [vmem:[%s4153_s28 + $0x548] ss:$16 sps:$4 sm:$0xff]  }
 0x101   : > { %2012 = vmatpush1.bf16.msra.mxu0 %v3517_v57  ;;  %2184 = vmatpush1.bf16.msra.mxu1 %v3520_v58  ;;  %v3609_v57 = vld [vmem:[%s4153_s28 + $0x564] ss:$16 sps:$4 sm:$0xff]   ;;  %v3612_v58 = vld [vmem:[%s4153_s28 + $0x56c] ss:$16 sps:$4 sm:$0xff]  }
 0x102   : > { %2013 = vmatprep.subr.bf16.mxu0 %v3525_v59  ;;  %2185 = vmatprep.subr.bf16.mxu1 %v3528_v60  ;;  %v3607_v59 = vld [vmem:[%s4153_s28 + $0x560] ss:$16 sps:$4 sm:$0xff]   ;;  %v3610_v60 = vld [vmem:[%s4153_s28 + $0x568] ss:$16 sps:$4 sm:$0xff]  }
 0x105   : > { %2014 = vmatpush1.bf16.msra.mxu0 %v3523_v61  ;;  %2186 = vmatpush1.bf16.msra.mxu1 %v3526_v62  ;;  %v3615_v61 = vld [vmem:[%s4153_s28 + $0x584] ss:$16 sps:$4 sm:$0xff]   ;;  %v3618_v62 = vld [vmem:[%s4153_s28 + $0x58c] ss:$16 sps:$4 sm:$0xff]  }
 0x106   : > { %2015 = vmatprep.subr.bf16.mxu0 %v3531_v63  ;;  %2187 = vmatprep.subr.bf16.mxu1 %v3534_v0  ;;  %v3613_v63 = vld [vmem:[%s4153_s28 + $0x580] ss:$16 sps:$4 sm:$0xff]   ;;  %v3616_v0 = vld [vmem:[%s4153_s28 + $0x588] ss:$16 sps:$4 sm:$0xff]  }
 0x109   : > { %2016 = vmatpush1.bf16.msra.mxu0 %v3529_v1  ;;  %2188 = vmatpush1.bf16.msra.mxu1 %v3532_v2  ;;  %v3621_v1 = vld [vmem:[%s4153_s28 + $0x5a4] ss:$16 sps:$4 sm:$0xff]   ;;  %v3624_v2 = vld [vmem:[%s4153_s28 + $0x5ac] ss:$16 sps:$4 sm:$0xff]  }
 0x10a   : > { %2017 = vmatprep.subr.bf16.mxu0 %v3537_v3  ;;  %2189 = vmatprep.subr.bf16.mxu1 %v3540_v4  ;;  %v3619_v3 = vld [vmem:[%s4153_s28 + $0x5a0] ss:$16 sps:$4 sm:$0xff]   ;;  %v3622_v4 = vld [vmem:[%s4153_s28 + $0x5a8] ss:$16 sps:$4 sm:$0xff]  }
 0x10d   : > { %2018 = vmatpush1.bf16.msra.mxu0 %v3535_v5  ;;  %2190 = vmatpush1.bf16.msra.mxu1 %v3538_v6  ;;  %v3627_v5 = vld [vmem:[%s4153_s28 + $0x5c4] ss:$16 sps:$4 sm:$0xff]   ;;  %v3630_v6 = vld [vmem:[%s4153_s28 + $0x5cc] ss:$16 sps:$4 sm:$0xff]  }
 0x10e   : > { %2030 = vmatprep.subr.bf16.mxu0 %v3543_v7  ;;  %2202 = vmatprep.subr.bf16.mxu1 %v3546_v8  ;;  %v3625_v7 = vld [vmem:[%s4153_s28 + $0x5c0] ss:$16 sps:$4 sm:$0xff]   ;;  %v3628_v8 = vld [vmem:[%s4153_s28 + $0x5c8] ss:$16 sps:$4 sm:$0xff]  }
 0x110   : > { %2020 = vmatmul.mubr.bf16.vlgmr.msra.gmra.mrb[0].mxu0 %v2851_v9  ;;  %2192 = vmatmul.mubr.bf16.vlgmr.msra.gmra.mrb[0].mxu1 %v2851_v9  ;;  %v3633_v9 = vld [vmem:[%s4153_s28 + $0x5e4] ss:$16 sps:$4 sm:$0xff]  }
 0x111   : > { %2031 = vmatpush1.bf16.msra.mxu0 %v3541_v10  ;;  %2203 = vmatpush1.bf16.msra.mxu1 %v3544_v11  ;;  %v3636_v10 = vld [vmem:[%s4153_s28 + $0x5ec] ss:$16 sps:$4 sm:$0xff]   ;;  %v3631_v11 = vld [vmem:[%s4153_s28 + $0x5e0] ss:$16 sps:$4 sm:$0xff]  }
 0x112   : > { %2032 = vmatprep.subr.bf16.mxu0 %v3549_v12  ;;  %2204 = vmatprep.subr.bf16.mxu1 %v3552_v13  ;;  %v3634_v12 = vld [vmem:[%s4153_s28 + $0x5e8] ss:$16 sps:$4 sm:$0xff]   ;;  %v3639_v13 = vld [vmem:[%s4153_s28 + $0x604] ss:$16 sps:$4 sm:$0xff]  }
 0x113   : > { %2062 = vmatprep.mubr.bf16.mxu0 %v2854_v16  ;;  %2234 = vmatprep.mubr.bf16.mxu1 %v2854_v16  ;;  %v3642_v16 = vld [vmem:[%s4153_s28 + $0x60c] ss:$16 sps:$4 sm:$0xff]  }
 0x115   : > { %2033 = vmatpush1.bf16.msra.mxu0 %v3547_v17  ;;  %2205 = vmatpush1.bf16.msra.mxu1 %v3550_v18  ;;  %v2853_v17 = vcombine.low %v4309_v14, %v4311_v15  ;;  %v4380_v18 = vld [vmem:[#allocation4 + $0x18] sm:$0xff]  ;;  %v3643_v15 = vld [vmem:[%s4153_s28 + $0x620] ss:$16 sps:$4 sm:$0xff]  }
 0x116   : > { %2034 = vmatprep.subr.bf16.mxu0 %v3555_v19  ;;  %2206 = vmatprep.subr.bf16.mxu1 %v3558_v20  ;;  %v4382_v19 = vld [vmem:[#allocation4 + $0x38] sm:$0xff]  ;;  %v3637_v20 = vld [vmem:[%s4153_s28 + $0x600] ss:$16 sps:$4 sm:$0xff]  }
 0x117   : > { %v2856_v14 = vcombine.high %v4380_v18, %v4382_v19 }
 0x119   : > { %2035 = vmatpush1.bf16.msra.mxu0 %v3553_v21  ;;  %2207 = vmatpush1.bf16.msra.mxu1 %v3556_v22  ;;  %v3640_v21 = vld [vmem:[%s4153_s28 + $0x608] ss:$16 sps:$4 sm:$0xff]   ;;  %v3645_v22 = vld [vmem:[%s4153_s28 + $0x624] ss:$16 sps:$4 sm:$0xff]  }
 0x11a   : > { %2036 = vmatprep.subr.bf16.mxu0 %v3561_v23  ;;  %2208 = vmatprep.subr.bf16.mxu1 %v3564_v24  ;;  %v3648_v23 = vld [vmem:[%s4153_s28 + $0x62c] ss:$16 sps:$4 sm:$0xff]   ;;  %v3646_v24 = vld [vmem:[%s4153_s28 + $0x628] ss:$16 sps:$4 sm:$0xff]  }
 0x11d   : > { %2037 = vmatpush1.bf16.msra.mxu0 %v3559_v26  ;;  %2209 = vmatpush1.bf16.msra.mxu1 %v3562_v27  ;;  %v3654_v26 = vld [vmem:[%s4153_s28 + $0x64c] ss:$16 sps:$4 sm:$0xff]   ;;  %v3649_v27 = vld [vmem:[%s4153_s28 + $0x640] ss:$16 sps:$4 sm:$0xff]  }
 0x11e   : > { %2038 = vmatprep.subr.bf16.mxu0 %v3567_v28  ;;  %2210 = vmatprep.subr.bf16.mxu1 %v3570_v29  ;;  %v3652_v28 = vld [vmem:[%s4153_s28 + $0x648] ss:$16 sps:$4 sm:$0xff]   ;;  %v3657_v29 = vld [vmem:[%s4153_s28 + $0x664] ss:$16 sps:$4 sm:$0xff]  }
 0x11f   : > { %s3284_s9 = spop %3283 }
 0x121   : > { %2039 = vmatpush1.bf16.msra.mxu0 %v3565_v30  ;;  %2211 = vmatpush1.bf16.msra.mxu1 %v3568_v31  ;;  %v3660_v30 = vld [vmem:[%s4153_s28 + $0x66c] ss:$16 sps:$4 sm:$0xff]   ;;  %v3655_v31 = vld [vmem:[%s4153_s28 + $0x660] ss:$16 sps:$4 sm:$0xff]  }
 0x122   : > { %2040 = vmatprep.subr.bf16.mxu0 %v3573_v32  ;;  %2212 = vmatprep.subr.bf16.mxu1 %v3576_v33  ;;  %v3658_v32 = vld [vmem:[%s4153_s28 + $0x668] ss:$16 sps:$4 sm:$0xff]   ;;  %v3663_v33 = vld [vmem:[%s4153_s28 + $0x684] ss:$16 sps:$4 sm:$0xff]  }
 0x125   : > { %2041 = vmatpush1.bf16.msra.mxu0 %v3571_v34  ;;  %2213 = vmatpush1.bf16.msra.mxu1 %v3574_v35  ;;  %v3666_v34 = vld [vmem:[%s4153_s28 + $0x68c] ss:$16 sps:$4 sm:$0xff]   ;;  %v3661_v35 = vld [vmem:[%s4153_s28 + $0x680] ss:$16 sps:$4 sm:$0xff]  }
 0x126   : > { %2042 = vmatprep.subr.bf16.mxu0 %v3579_v36  ;;  %2214 = vmatprep.subr.bf16.mxu1 %v3582_v37  ;;  %v3664_v36 = vld [vmem:[%s4153_s28 + $0x688] ss:$16 sps:$4 sm:$0xff]   ;;  %v3669_v37 = vld [vmem:[%s4153_s28 + $0x6a4] ss:$16 sps:$4 sm:$0xff]  }
 0x129   : > { %2043 = vmatpush1.bf16.msra.mxu0 %v3577_v39  ;;  %2215 = vmatpush1.bf16.msra.mxu1 %v3580_v40  ;;  %v3667_v39 = vld [vmem:[%s4153_s28 + $0x6a0] ss:$16 sps:$4 sm:$0xff]   ;;  %v3670_v40 = vld [vmem:[%s4153_s28 + $0x6a8] ss:$16 sps:$4 sm:$0xff]  }
 0x12a   : > { %2044 = vmatprep.subr.bf16.mxu0 %v3585_v41  ;;  %2216 = vmatprep.subr.bf16.mxu1 %v3588_v42  ;;  %v3675_v41 = vld [vmem:[%s4153_s28 + $0x6c4] ss:$16 sps:$4 sm:$0xff]   ;;  %v3678_v42 = vld [vmem:[%s4153_s28 + $0x6cc] ss:$16 sps:$4 sm:$0xff]  }
 0x12d   : > { %2045 = vmatpush1.bf16.msra.mxu0 %v3583_v43  ;;  %2217 = vmatpush1.bf16.msra.mxu1 %v3586_v44  ;;  %v3673_v43 = vld [vmem:[%s4153_s28 + $0x6c0] ss:$16 sps:$4 sm:$0xff]   ;;  %v3676_v44 = vld [vmem:[%s4153_s28 + $0x6c8] ss:$16 sps:$4 sm:$0xff]  }
 0x12e   : > { %2046 = vmatprep.subr.bf16.mxu0 %v3591_v45  ;;  %2218 = vmatprep.subr.bf16.mxu1 %v3594_v46  ;;  %v3681_v45 = vld [vmem:[%s4153_s28 + $0x6e4] ss:$16 sps:$4 sm:$0xff]   ;;  %v3684_v46 = vld [vmem:[%s4153_s28 + $0x6ec] ss:$16 sps:$4 sm:$0xff]  }
 0x131   : > { %2047 = vmatpush1.bf16.msra.mxu0 %v3589_v47  ;;  %2219 = vmatpush1.bf16.msra.mxu1 %v3592_v48  ;;  %v3679_v47 = vld [vmem:[%s4153_s28 + $0x6e0] ss:$16 sps:$4 sm:$0xff]   ;;  %v3682_v48 = vld [vmem:[%s4153_s28 + $0x6e8] ss:$16 sps:$4 sm:$0xff]  }
 0x132   : > { %2048 = vmatprep.subr.bf16.mxu0 %v3597_v49  ;;  %2220 = vmatprep.subr.bf16.mxu1 %v3600_v50  ;;  %v3687_v49 = vld [vmem:[%s4153_s28 + $0x704] ss:$16 sps:$4 sm:$0xff]   ;;  %v3690_v50 = vld [vmem:[%s4153_s28 + $0x70c] ss:$16 sps:$4 sm:$0xff]  }
 0x135   : > { %2049 = vmatpush1.bf16.msra.mxu0 %v3595_v51  ;;  %2221 = vmatpush1.bf16.msra.mxu1 %v3598_v52  ;;  %v3685_v51 = vld [vmem:[%s4153_s28 + $0x700] ss:$16 sps:$4 sm:$0xff]   ;;  %v3688_v52 = vld [vmem:[%s4153_s28 + $0x708] ss:$16 sps:$4 sm:$0xff]  }
 0x136   : > { %2050 = vmatprep.subr.bf16.mxu0 %v3603_v53  ;;  %2222 = vmatprep.subr.bf16.mxu1 %v3606_v54  ;;  %v3693_v53 = vld [vmem:[%s4153_s28 + $0x724] ss:$16 sps:$4 sm:$0xff]   ;;  %v3696_v54 = vld [vmem:[%s4153_s28 + $0x72c] ss:$16 sps:$4 sm:$0xff]  }
 0x139   : > { %2051 = vmatpush1.bf16.msra.mxu0 %v3601_v55  ;;  %2223 = vmatpush1.bf16.msra.mxu1 %v3604_v56  ;;  %v3691_v55 = vld [vmem:[%s4153_s28 + $0x720] ss:$16 sps:$4 sm:$0xff]   ;;  %v3694_v56 = vld [vmem:[%s4153_s28 + $0x728] ss:$16 sps:$4 sm:$0xff]  }
 0x13a   : > { %2052 = vmatprep.subr.bf16.mxu0 %v3609_v57  ;;  %2224 = vmatprep.subr.bf16.mxu1 %v3612_v58  ;;  %v3699_v57 = vld [vmem:[%s4153_s28 + $0x744] ss:$16 sps:$4 sm:$0xff]   ;;  %v3702_v58 = vld [vmem:[%s4153_s28 + $0x74c] ss:$16 sps:$4 sm:$0xff]  }
 0x13d   : > { %2053 = vmatpush1.bf16.msra.mxu0 %v3607_v59  ;;  %2225 = vmatpush1.bf16.msra.mxu1 %v3610_v60  ;;  %v3697_v59 = vld [vmem:[%s4153_s28 + $0x740] ss:$16 sps:$4 sm:$0xff]   ;;  %v3700_v60 = vld [vmem:[%s4153_s28 + $0x748] ss:$16 sps:$4 sm:$0xff]  }
 0x13e   : > { %2054 = vmatprep.subr.bf16.mxu0 %v3615_v61  ;;  %2226 = vmatprep.subr.bf16.mxu1 %v3618_v62  ;;  %v3705_v61 = vld [vmem:[%s4153_s28 + $0x764] ss:$16 sps:$4 sm:$0xff]   ;;  %v3708_v62 = vld [vmem:[%s4153_s28 + $0x76c] ss:$16 sps:$4 sm:$0xff]  }
 0x141   : > { %2055 = vmatpush1.bf16.msra.mxu0 %v3613_v63  ;;  %2227 = vmatpush1.bf16.msra.mxu1 %v3616_v0  ;;  %v3703_v63 = vld [vmem:[%s4153_s28 + $0x760] ss:$16 sps:$4 sm:$0xff]   ;;  %v3706_v0 = vld [vmem:[%s4153_s28 + $0x768] ss:$16 sps:$4 sm:$0xff]  }
 0x142   : > { %2056 = vmatprep.subr.bf16.mxu0 %v3621_v1  ;;  %2228 = vmatprep.subr.bf16.mxu1 %v3624_v2  ;;  %v3711_v1 = vld [vmem:[%s4153_s28 + $0x784] ss:$16 sps:$4 sm:$0xff]   ;;  %v3714_v2 = vld [vmem:[%s4153_s28 + $0x78c] ss:$16 sps:$4 sm:$0xff]  }
 0x145   : > { %2057 = vmatpush1.bf16.msra.mxu0 %v3619_v3  ;;  %2229 = vmatpush1.bf16.msra.mxu1 %v3622_v4  ;;  %v3709_v3 = vld [vmem:[%s4153_s28 + $0x780] ss:$16 sps:$4 sm:$0xff]   ;;  %v3712_v4 = vld [vmem:[%s4153_s28 + $0x788] ss:$16 sps:$4 sm:$0xff]  }
 0x146   : > { %2058 = vmatprep.subr.bf16.mxu0 %v3627_v5  ;;  %2230 = vmatprep.subr.bf16.mxu1 %v3630_v6  ;;  %v3717_v5 = vld [vmem:[%s4153_s28 + $0x7a4] ss:$16 sps:$4 sm:$0xff]   ;;  %v3720_v6 = vld [vmem:[%s4153_s28 + $0x7ac] ss:$16 sps:$4 sm:$0xff]  }
 0x149   : > { %2059 = vmatpush1.bf16.msra.mxu0 %v3625_v7  ;;  %2231 = vmatpush1.bf16.msra.mxu1 %v3628_v8  ;;  %v3715_v7 = vld [vmem:[%s4153_s28 + $0x7a0] ss:$16 sps:$4 sm:$0xff]   ;;  %v3718_v8 = vld [vmem:[%s4153_s28 + $0x7a8] ss:$16 sps:$4 sm:$0xff]  }
 0x14a   : > { %2060 = vmatprep.subr.bf16.mxu0 %v3633_v9  ;;  %2232 = vmatprep.subr.bf16.mxu1 %v3636_v10  ;;  %v3723_v9 = vld [vmem:[%s4153_s28 + $0x7c4] ss:$16 sps:$4 sm:$0xff]   ;;  %v3726_v10 = vld [vmem:[%s4153_s28 + $0x7cc] ss:$16 sps:$4 sm:$0xff]  }
 0x14d   : > { %2061 = vmatpush1.bf16.msra.mxu0 %v3631_v11  ;;  %2233 = vmatpush1.bf16.msra.mxu1 %v3634_v12  ;;  %v3721_v11 = vld [vmem:[%s4153_s28 + $0x7c0] ss:$16 sps:$4 sm:$0xff]   ;;  %v3724_v12 = vld [vmem:[%s4153_s28 + $0x7c8] ss:$16 sps:$4 sm:$0xff]  }
 0x14e   : > { %2073 = vmatprep.subr.bf16.mxu0 %v3639_v13  ;;  %2245 = vmatprep.subr.bf16.mxu1 %v3642_v16  ;;  %v3729_v13 = vld [vmem:[%s4153_s28 + $0x7e4] ss:$16 sps:$4 sm:$0xff]   ;;  %v3732_v16 = vld [vmem:[%s4153_s28 + $0x7ec] ss:$16 sps:$4 sm:$0xff]  }
 0x150   : > { %2063 = vmatmul.mubr.bf16.vlgmr.msra.gmra.mrb[0].mxu0 %v2853_v17  ;;  %2235 = vmatmul.mubr.bf16.vlgmr.msra.gmra.mrb[0].mxu1 %v2853_v17  ;;  %v3727_v17 = vld [vmem:[%s4153_s28 + $0x7e0] ss:$16 sps:$4 sm:$0xff]  }
 0x151   : > { %2074 = vmatpush1.bf16.msra.mxu0 %v3637_v20  ;;  %2246 = vmatpush1.bf16.msra.mxu1 %v3640_v21  ;;  %v3730_v20 = vld [vmem:[%s4153_s28 + $0x7e8] ss:$16 sps:$4 sm:$0xff]   ;;  %v2855_v21 = vcombine.low %v4380_v18, %v4382_v19  ;;  %v2307_v18 = vld [vmem:[%s4454_s21 + $0x80] sm:$0xff] }
 0x152   : > { %2075 = vmatprep.subr.bf16.mxu0 %v3645_v22  ;;  %2247 = vmatprep.subr.bf16.mxu1 %v3648_v23  ;;  %v2308_v19 = vld [vmem:[%s4454_s21 + $0x88] sm:$0xff]  ;;  %v2339_v22 = vld [vmem:[%s4454_s21 + $0x180] sm:$0xff] }
 0x153   : > { %2105 = vmatprep.mubr.bf16.mxu0 %v2856_v14  ;;  %2277 = vmatprep.mubr.bf16.mxu1 %v2856_v14  ;;  %v3195_v23 = vpack.c.bf16 %v2308_v19, %v2307_v18  ;;  %v2340_v14 = vld [vmem:[%s4454_s21 + $0x188] sm:$0xff]  ;;  %v2301_v19 = vld [vmem:[%s4454_s21 + $0x50] sm:$0xff] }
 0x155   : > { %2076 = vmatpush1.bf16.msra.mxu0 %v3643_v15  ;;  %2248 = vmatpush1.bf16.msra.mxu1 %v3646_v24  ;;  %v2291_v15 = vld [vmem:[%s4454_s21] sm:$0xff]  ;;  %v2292_v24 = vld [vmem:[%s4454_s21 + $0x8] sm:$0xff] }
 0x156   : > { %2077 = vmatprep.subr.bf16.mxu0 %v3651_v25  ;;  %2249 = vmatprep.subr.bf16.mxu1 %v3654_v26  ;;  %v3227_v25 = vpack.c.bf16 %v2340_v14, %v2339_v22  ;;  %v3197_v26 = vpack.c.bf16 %v2292_v24, %v2291_v15  ;;  %v2302_v22 = vld [vmem:[%s4454_s21 + $0x58] sm:$0xff]  ;;  %v2319_v24 = vld [vmem:[%s4454_s21 + $0xe0] sm:$0xff] }
 0x157   : > { %v2334_v15 = vld [vmem:[%s4454_s21 + $0x158] sm:$0xff] }
 0x159   : > { %2078 = vmatpush1.bf16.msra.mxu0 %v3649_v27  ;;  %2250 = vmatpush1.bf16.msra.mxu1 %v3652_v28  ;;  %v2323_v27 = vld [vmem:[%s4454_s21 + $0x100] sm:$0xff]  ;;  %v2324_v28 = vld [vmem:[%s4454_s21 + $0x108] sm:$0xff] }
 0x15a   : > { %2079 = vmatprep.subr.bf16.mxu0 %v3657_v29  ;;  %2251 = vmatprep.subr.bf16.mxu1 %v3660_v30  ;;  %v2309_v29 = vld [vmem:[%s4454_s21 + $0x90] sm:$0xff]  ;;  %v3229_v30 = vpack.c.bf16 %v2324_v28, %v2323_v27  ;;  %v2352_v27 = vld [vmem:[%s4454_s21 + $0x1e8] sm:$0xff]  ;;  %v3217_v28 = vpack.c.bf16 %v2302_v22, %v2301_v19  ;;  %v4522_v22 = vstv %s3284_s9 }
 0x15d   : > { %2080 = vmatpush1.bf16.msra.mxu0 %v3655_v31  ;;  %2252 = vmatpush1.bf16.msra.mxu1 %v3658_v32  ;;  %v2310_v31 = vld [vmem:[%s4454_s21 + $0x98] sm:$0xff]  ;;  %v2341_v32 = vld [vmem:[%s4454_s21 + $0x190] sm:$0xff] }
 0x15e   : > { %2081 = vmatprep.subr.bf16.mxu0 %v3663_v33  ;;  %2253 = vmatprep.subr.bf16.mxu1 %v3666_v34  ;;  %v2342_v33 = vld [vmem:[%s4454_s21 + $0x198] sm:$0xff]  ;;  %v3199_v34 = vpack.c.bf16 %v2310_v31, %v2309_v29  ;;  %v2303_v31 = vld [vmem:[%s4454_s21 + $0x60] sm:$0xff] }
 0x161   : > { %2082 = vmatpush1.bf16.msra.mxu0 %v3661_v35  ;;  %2254 = vmatpush1.bf16.msra.mxu1 %v3664_v36  ;;  %v3231_v35 = vpack.c.bf16 %v2342_v33, %v2341_v32  ;;  %v2293_v36 = vld [vmem:[%s4454_s21 + $0x10] sm:$0xff]  ;;  %v2304_v32 = vld [vmem:[%s4454_s21 + $0x68] sm:$0xff]  ;;  %v2335_v33 = vld [vmem:[%s4454_s21 + $0x160] sm:$0xff] }
 0x162   : > { %2083 = vmatprep.subr.bf16.mxu0 %v3669_v37  ;;  %2255 = vmatprep.subr.bf16.mxu1 %v3672_v38  ;;  %v2294_v37 = vld [vmem:[%s4454_s21 + $0x18] sm:$0xff]  ;;  %v2325_v38 = vld [vmem:[%s4454_s21 + $0x110] sm:$0xff] }
 0x165   : > { %2084 = vmatpush1.bf16.msra.mxu0 %v3667_v39  ;;  %2256 = vmatpush1.bf16.msra.mxu1 %v3670_v40  ;;  %v3201_v39 = vpack.c.bf16 %v2294_v37, %v2293_v36  ;;  %v2326_v40 = vld [vmem:[%s4454_s21 + $0x118] sm:$0xff]  ;;  %v2321_v36 = vld [vmem:[%s4454_s21 + $0xf0] sm:$0xff] }
 0x166   : > { %2085 = vmatprep.subr.bf16.mxu0 %v3675_v41  ;;  %2257 = vmatprep.subr.bf16.mxu1 %v3678_v42  ;;  %v2311_v41 = vld [vmem:[%s4454_s21 + $0xa0] sm:$0xff]  ;;  %v2312_v42 = vld [vmem:[%s4454_s21 + $0xa8] sm:$0xff]  ;;  %v2322_v37 = vld [vmem:[%s4454_s21 + $0xf8] sm:$0xff] }
 0x169   : > { %2086 = vmatpush1.bf16.msra.mxu0 %v3673_v43  ;;  %2258 = vmatpush1.bf16.msra.mxu1 %v3676_v44  ;;  %v3233_v43 = vpack.c.bf16 %v2326_v40, %v2325_v38  ;;  %v3203_v44 = vpack.c.bf16 %v2312_v42, %v2311_v41  ;;  %v2353_v38 = vld [vmem:[%s4454_s21 + $0x1f0] sm:$0xff]  ;;  %v3221_v40 = vpack.c.bf16 %v2304_v32, %v2303_v31 }
 0x16a   : > { %2087 = vmatprep.subr.bf16.mxu0 %v3681_v45  ;;  %2259 = vmatprep.subr.bf16.mxu1 %v3684_v46  ;;  %v2343_v45 = vld [vmem:[%s4454_s21 + $0x1a0] sm:$0xff]  ;;  %v2344_v46 = vld [vmem:[%s4454_s21 + $0x1a8] sm:$0xff]  ;;  %v3223_v42 = vpack.c.bf16 %v2322_v37, %v2321_v36 }
 0x16d   : > { %2088 = vmatpush1.bf16.msra.mxu0 %v3679_v47  ;;  %2260 = vmatpush1.bf16.msra.mxu1 %v3682_v48  ;;  %v2295_v47 = vld [vmem:[%s4454_s21 + $0x20] sm:$0xff]  ;;  %v3235_v48 = vpack.c.bf16 %v2344_v46, %v2343_v45  ;;  %v2337_v46 = vld [vmem:[%s4454_s21 + $0x170] sm:$0xff] }
 0x16e   : > { %2089 = vmatprep.subr.bf16.mxu0 %v3687_v49  ;;  %2261 = vmatprep.subr.bf16.mxu1 %v3690_v50  ;;  %v2296_v49 = vld [vmem:[%s4454_s21 + $0x28] sm:$0xff]  ;;  %v2327_v50 = vld [vmem:[%s4454_s21 + $0x120] sm:$0xff] }
 0x171   : > { %2090 = vmatpush1.bf16.msra.mxu0 %v3685_v51  ;;  %2262 = vmatpush1.bf16.msra.mxu1 %v3688_v52  ;;  %v2328_v51 = vld [vmem:[%s4454_s21 + $0x128] sm:$0xff]  ;;  %v3205_v52 = vpack.c.bf16 %v2296_v49, %v2295_v47  ;;  %v2338_v47 = vld [vmem:[%s4454_s21 + $0x178] sm:$0xff] }
 0x172   : > { %2091 = vmatprep.subr.bf16.mxu0 %v3693_v53  ;;  %2263 = vmatprep.subr.bf16.mxu1 %v3696_v54  ;;  %v2313_v53 = vld [vmem:[%s4454_s21 + $0xb0] sm:$0xff]  ;;  %v2314_v54 = vld [vmem:[%s4454_s21 + $0xb8] sm:$0xff]  ;;  %v3257_v49 = vpack.c.bf16 %v2338_v47, %v2337_v46 }
 0x175   : > { %2092 = vmatpush1.bf16.msra.mxu0 %v3691_v55  ;;  %2264 = vmatpush1.bf16.msra.mxu1 %v3694_v56  ;;  %v2345_v55 = vld [vmem:[%s4454_s21 + $0x1b0] sm:$0xff]  ;;  %v3237_v56 = vpack.c.bf16 %v2328_v51, %v2327_v50 }
 0x176   : > { %2093 = vmatprep.subr.bf16.mxu0 %v3699_v57  ;;  %2265 = vmatprep.subr.bf16.mxu1 %v3702_v58  ;;  %v3207_v57 = vpack.c.bf16 %v2314_v54, %v2313_v53  ;;  %v2346_v58 = vld [vmem:[%s4454_s21 + $0x1b8] sm:$0xff] }
 0x179   : > { %2094 = vmatpush1.bf16.msra.mxu0 %v3697_v59  ;;  %2266 = vmatpush1.bf16.msra.mxu1 %v3700_v60  ;;  %v2297_v59 = vld [vmem:[%s4454_s21 + $0x30] sm:$0xff]  ;;  %v2298_v60 = vld [vmem:[%s4454_s21 + $0x38] sm:$0xff] }
 0x17a   : > { %2095 = vmatprep.subr.bf16.mxu0 %v3705_v61  ;;  %2267 = vmatprep.subr.bf16.mxu1 %v3708_v62  ;;  %v3239_v61 = vpack.c.bf16 %v2346_v58, %v2345_v55  ;;  %v2329_v62 = vld [vmem:[%s4454_s21 + $0x130] sm:$0xff] }
 0x17d   : > { %2096 = vmatpush1.bf16.msra.mxu0 %v3703_v63  ;;  %2268 = vmatpush1.bf16.msra.mxu1 %v3706_v0  ;;  %v2330_v63 = vld [vmem:[%s4454_s21 + $0x138] sm:$0xff]  ;;  %v2315_v0 = vld [vmem:[%s4454_s21 + $0xc0] sm:$0xff] }
 0x17e   : > { %2097 = vmatprep.subr.bf16.mxu0 %v3711_v1  ;;  %2269 = vmatprep.subr.bf16.mxu1 %v3714_v2  ;;  %v2316_v1 = vld [vmem:[%s4454_s21 + $0xc8] sm:$0xff]  ;;  %v2347_v2 = vld [vmem:[%s4454_s21 + $0x1c0] sm:$0xff] }
 0x181   : > { %2098 = vmatpush1.bf16.msra.mxu0 %v3709_v3  ;;  %2270 = vmatpush1.bf16.msra.mxu1 %v3712_v4  ;;  %v2348_v3 = vld [vmem:[%s4454_s21 + $0x1c8] sm:$0xff]  ;;  %v3209_v4 = vpack.c.bf16 %v2298_v60, %v2297_v59 }
 0x182   : > { %2099 = vmatprep.subr.bf16.mxu0 %v3717_v5  ;;  %2271 = vmatprep.subr.bf16.mxu1 %v3720_v6  ;;  %v3241_v5 = vpack.c.bf16 %v2330_v63, %v2329_v62  ;;  %v3211_v6 = vpack.c.bf16 %v2316_v1, %v2315_v0 }
 0x185   : > { %2100 = vmatpush1.bf16.msra.mxu0 %v3715_v7  ;;  %2272 = vmatpush1.bf16.msra.mxu1 %v3718_v8  ;;  %v2299_v7 = vld [vmem:[%s4454_s21 + $0x40] sm:$0xff]  ;;  %v2300_v8 = vld [vmem:[%s4454_s21 + $0x48] sm:$0xff] }
 0x186   : > { %2101 = vmatprep.subr.bf16.mxu0 %v3723_v9  ;;  %2273 = vmatprep.subr.bf16.mxu1 %v3726_v10  ;;  %v2331_v9 = vld [vmem:[%s4454_s21 + $0x140] sm:$0xff]  ;;  %v3243_v10 = vpack.c.bf16 %v2348_v3, %v2347_v2  ;;  %v2359_v2 = vlaneseq }
 0x189   : > { %2102 = vmatpush1.bf16.msra.mxu0 %v3721_v11  ;;  %2274 = vmatpush1.bf16.msra.mxu1 %v3724_v12  ;;  %v2332_v11 = vld [vmem:[%s4454_s21 + $0x148] sm:$0xff]  ;;  %v2317_v12 = vld [vmem:[%s4454_s21 + $0xd0] sm:$0xff] }
 0x18a   : > { %2103 = vmatprep.subr.bf16.mxu0 %v3729_v13  ;;  %2275 = vmatprep.subr.bf16.mxu1 %v3732_v16  ;;  %v2318_v13 = vld [vmem:[%s4454_s21 + $0xd8] sm:$0xff]  ;;  %v2349_v16 = vld [vmem:[%s4454_s21 + $0x1d0] sm:$0xff] }
 0x18b   : > { %v3215_v18 = vpack.c.bf16 %v2318_v13, %v2317_v12 }
 0x18d   : > { %2104 = vmatpush1.bf16.msra.mxu0 %v3727_v17  ;;  %2276 = vmatpush1.bf16.msra.mxu1 %v3730_v20  ;;  %v2350_v17 = vld [vmem:[%s4454_s21 + $0x1d8] sm:$0xff]  ;;  %v3213_v20 = vpack.c.bf16 %v2300_v8, %v2299_v7 }
 0x18e   : > { %3196 = vmatprep.subr.bf16.mxu0 %v3195_v23  ;;  %3228 = vmatprep.subr.bf16.mxu1 %v3227_v25  ;;  %v2333_v23 = vld [vmem:[%s4454_s21 + $0x150] sm:$0xff]  ;;  %v3247_v14 = vpack.c.bf16 %v2350_v17, %v2349_v16  ;;  %v2320_v25 = vld [vmem:[%s4454_s21 + $0xe8] sm:$0xff] }
 0x18f   : > { %v3249_v29 = vpack.c.bf16 %v2334_v15, %v2333_v23 }
 0x190   : > { %2106 = vmatmul.mubr.bf16.vlgmr.msra.gmra.mrb[0].mxu0 %v2855_v21  ;;  %2278 = vmatmul.mubr.bf16.vlgmr.msra.gmra.mrb[0].mxu1 %v2855_v21  ;;  %v3245_v21 = vpack.c.bf16 %v2332_v11, %v2331_v9  ;;  %v4520_v11 = vshrl.u32 %v2359_v2, 7 }
 0x191   : > { %3198 = vmatpush3.bf16.msra.mxu0 %v3197_v26  ;;  %3230 = vmatpush3.bf16.msra.mxu1 %v3229_v30  ;;  %v2351_v26 = vld [vmem:[%s4454_s21 + $0x1e0] sm:$0xff]  ;;  %v3219_v30 = vpack.c.bf16 %v2320_v25, %v2319_v24  ;;  %v2362_v24 = vstv %s4315_s19 }
 0x192   : > { %3200 = vmatprep.subr.bf16.mxu0 %v3199_v34  ;;  %3232 = vmatprep.subr.bf16.mxu1 %v3231_v35  ;;  %v3251_v34 = vpack.c.bf16 %v2352_v27, %v2351_v26  ;;  %v2336_v35 = vld [vmem:[%s4454_s21 + $0x168] sm:$0xff]  ;;  %v2361_v23 = vadd.s32 8, %v4520_v11  ;;  %vm4529_vm0 = vcmp.lt.s32.totalorder %v4520_v11, %v2362_v24 }
 0x193   : > { %v3253_v41 = vpack.c.bf16 %v2336_v35, %v2335_v33 }
 0x194   : > { %vm4533_vm1 = vcmp.lt.s32.totalorder %v2361_v23, %v2362_v24 }
 0x195   : > { %3202 = vmatpush3.bf16.msra.mxu0 %v3201_v39  ;;  %3234 = vmatpush3.bf16.msra.mxu1 %v3233_v43  ;;  %v2354_v39 = vld [vmem:[%s4454_s21 + $0x1f8] sm:$0xff]  ;;  %v2305_v43 = vld [vmem:[%s4454_s21 + $0x70] sm:$0xff] }
 0x196   : > { %3204 = vmatprep.subr.bf16.mxu0 %v3203_v44  ;;  %3236 = vmatprep.subr.bf16.mxu1 %v3235_v48  ;;  %v2306_v44 = vld [vmem:[%s4454_s21 + $0x78] sm:$0xff]  ;;  %v3255_v45 = vpack.c.bf16 %v2354_v39, %v2353_v38 }
 0x197   : > { %v3225_v48 = vpack.c.bf16 %v2306_v44, %v2305_v43 }
 0x199   : > { %3206 = vmatpush3.bf16.msra.mxu0 %v3205_v52  ;;  %3238 = vmatpush3.bf16.msra.mxu1 %v3237_v56 }
 0x19a   : > { %3208 = vmatprep.subr.bf16.mxu0 %v3207_v57  ;;  %3240 = vmatprep.subr.bf16.mxu1 %v3239_v61 }
 0x19d   : > { %3210 = vmatpush3.bf16.msra.mxu0 %v3209_v4  ;;  %3242 = vmatpush3.bf16.msra.mxu1 %v3241_v5 }
 0x19e   : > { %3212 = vmatprep.subr.bf16.mxu0 %v3211_v6  ;;  %3244 = vmatprep.subr.bf16.mxu1 %v3243_v10 }
 0x1a1   : > { %3214 = vmatpush3.bf16.msra.mxu0 %v3213_v20  ;;  %3246 = vmatpush3.bf16.msra.mxu1 %v3245_v21 }
 0x1a2   : > { %3216 = vmatprep.subr.bf16.mxu0 %v3215_v18  ;;  %3248 = vmatprep.subr.bf16.mxu1 %v3247_v14 }
 0x1a5   : > { %3218 = vmatpush3.bf16.msra.mxu0 %v3217_v28  ;;  %3250 = vmatpush3.bf16.msra.mxu1 %v3249_v29 }
 0x1a6   : > { %3220 = vmatprep.subr.bf16.mxu0 %v3219_v30  ;;  %3252 = vmatprep.subr.bf16.mxu1 %v3251_v34 }
 0x1a9   : > { %3222 = vmatpush3.bf16.msra.mxu0 %v3221_v40  ;;  %3254 = vmatpush3.bf16.msra.mxu1 %v3253_v41 }
 0x1aa   : > { %3224 = vmatprep.subr.bf16.mxu0 %v3223_v42  ;;  %3256 = vmatprep.subr.bf16.mxu1 %v3255_v45 }
 0x1ad   : > { %3226 = vmatpush3.bf16.msra.mxu0 %v3225_v48  ;;  %3258 = vmatpush3.bf16.msra.mxu1 %v3257_v49 }
 0x263   : > { %v2107_v50 = vpop.f32.mrb[0].mxu0  ;;  %v2279_v51 = vpop.f32.mrb[0].mxu1 }
 0x264   : > { %v2109_v52 = vpop.f32.mrb[1].mxu0  ;;  %v2281_v53 = vpop.f32.mrb[1].mxu1 }
 0x265   : > { %v2111_v54 = vpop.f32.mrb[2].mxu0  ;;  %v2283_v55 = vpop.f32.mrb[2].mxu1 }
 0x266   : > { %v2365_v56 = vadd.f32 %v2111_v54, %v2107_v50  ;;  %v2379_v57 = vadd.f32 %v2283_v55, %v2279_v51  ;;  %v2113_v58 = vpop.f32.mrb[3].mxu0  ;;  %v2285_v59 = vpop.f32.mrb[3].mxu1 }
 0x267   : > { %v2372_v60 = vadd.f32 %v2113_v58, %v2109_v52  ;;  %v2386_v61 = vadd.f32 %v2285_v59, %v2281_v53 }
 0x268   : > { %v2366_v62 = vrot.slane %v2365_v56, 4  ;;  %v2380_v63 = vrot.slane %v2379_v57, 4 }
 0x269   : > { %v2373_v0 = vrot.slane %v2372_v60, 4  ;;  %v2387_v1 = vrot.slane %v2386_v61, 4 }
 0x26a   : > { %v2367_v3 = vadd.f32 %v2366_v62, %v2365_v56  ;;  %v2381_v4 = vadd.f32 %v2380_v63, %v2379_v57 }
 0x26b   : > { %v2374_v5 = vadd.f32 %v2373_v0, %v2372_v60  ;;  %v2388_v6 = vadd.f32 %v2387_v1, %v2386_v61 }
 0x26c   : > { %v2368_v7 = vrot.slane %v2367_v3, 2  ;;  %v2382_v8 = vrot.slane %v2381_v4, 2 }
 0x26d   : > { %v2375_v9 = vrot.slane %v2374_v5, 2  ;;  %v2389_v10 = vrot.slane %v2388_v6, 2 }
 0x26e   : > { %v2369_v12 = vadd.f32 %v2368_v7, %v2367_v3  ;;  %v2383_v13 = vadd.f32 %v2382_v8, %v2381_v4 }
 0x26f   : > { %v2376_v16 = vadd.f32 %v2375_v9, %v2374_v5  ;;  %v2390_v17 = vadd.f32 %v2389_v10, %v2388_v6 }
 0x270   : > { %v2370_v20 = vrot.slane %v2369_v12, 1  ;;  %v2384_v21 = vrot.slane %v2383_v13, 1 }
 0x271   : > { %v2377_v18 = vrot.slane %v2376_v16, 1  ;;  %v2391_v19 = vrot.slane %v2390_v17, 1 }
 0x272   : > { %v2371_v14 = vadd.f32 %v2370_v20, %v2369_v12  ;;  %v2385_v15 = vadd.f32 %v2384_v21, %v2383_v13 }
 0x273   : > { %v2378_v25 = vadd.f32 %v2377_v18, %v2376_v16  ;;  %v2392_v26 = vadd.f32 %v2391_v19, %v2390_v17 }
 0x274   : > { %v2394_v27 = vmul.f32 %v4522_v22, %v2371_v14  ;;  %v2396_v28 = vmul.f32 %v4522_v22, %v2385_v15 }
 0x275   : > { %v2395_v31 = vmul.f32 %v4522_v22, %v2378_v25  ;;  %v2397_v32 = vmul.f32 %v4522_v22, %v2392_v26 }
 0x276   : > { %v2402_v33 = vsub.f32 %v2111_v54, %v2394_v27  ;;  %v2404_v34 = vsub.f32 %v2283_v55, %v2396_v28  ;;  %v2398_v35 = vsub.f32 %v2107_v50, %v2394_v27  ;;  %v2400_v36 = vsub.f32 %v2279_v51, %v2396_v28 }
 0x277   : > { %v2399_v37 = vsub.f32 %v2109_v52, %v2395_v31  ;;  %v2403_v38 = vsub.f32 %v2113_v58, %v2395_v31  ;;  %v2401_v39 = vsub.f32 %v2281_v53, %v2397_v32  ;;  %v2405_v40 = vsub.f32 %v2285_v59, %v2397_v32  ;;  %v2289_v32 = vld [vmem:[%s4159_s20] sm:$0xf] }
 0x278   : > { %v4541_v41 = vsel %vm4529_vm0, %v2398_v35, 0.0  ;;  %v4545_v42 = vsel %vm4533_vm1, %v2402_v33, 0.0  ;;  %v4549_v43 = vsel %vm4529_vm0, %v2400_v36, 0.0  ;;  %v4553_v44 = vsel %vm4533_vm1, %v2404_v34, 0.0  ;;  %v2290_v35 = vld [vmem:[%s4161_s22] sm:$0xf] }
 0x279   : > { %v4557_v45 = vsel %vm4529_vm0, %v2399_v37, 0.0  ;;  %v4561_v46 = vsel %vm4533_vm1, %v2403_v38, 0.0  ;;  %v4565_v47 = vsel %vm4529_vm0, %v2401_v39, 0.0  ;;  %v4569_v48 = vsel %vm4533_vm1, %v2405_v40, 0.0 }
 0x27a   : > { %v2419_v49 = vmul.f32 %v4557_v45, %v4557_v45  ;;  %v2423_v50 = vmul.f32 %v4561_v46, %v4561_v46  ;;  %v2421_v51 = vmul.f32 %v4565_v47, %v4565_v47  ;;  %v2425_v52 = vmul.f32 %v4569_v48, %v4569_v48 }
 0x27b   : > { %v2418_v53 = vmul.f32 %v4541_v41, %v4541_v41  ;;  %v2422_v54 = vmul.f32 %v4545_v42, %v4545_v42  ;;  %v2420_v55 = vmul.f32 %v4549_v43, %v4549_v43  ;;  %v2424_v56 = vmul.f32 %v4553_v44, %v4553_v44 }
 0x27c   : > { %v2433_v57 = vadd.f32 %v2423_v50, %v2419_v49  ;;  %v2447_v58 = vadd.f32 %v2425_v52, %v2421_v51  ;;  %v2481_v31 = vsub.s32 1, %v4520_v11  ;;  %v2489_v33 = vsub.s32 3, %v4520_v11 }
 0x27d   : > { %v2426_v59 = vadd.f32 %v2422_v54, %v2418_v53  ;;  %v2440_v60 = vadd.f32 %v2424_v56, %v2420_v55  ;;  %v2477_v34 = vsub.s32 0, %v4520_v11  ;;  %v2485_v36 = vsub.s32 2, %v4520_v11 }
 0x27e   : > { %v2434_v61 = vrot.slane %v2433_v57, 4  ;;  %v2448_v62 = vrot.slane %v2447_v58, 4  ;;  %v2482_v37 = vrot.slane %v2289_v32, %v2481_v31  ;;  %v2511_v38 = vrot.slane %v2290_v35, %v2481_v31 }
 0x27f   : > { %v2427_v63 = vrot.slane %v2426_v59, 4  ;;  %v2441_v0 = vrot.slane %v2440_v60, 4  ;;  %v2490_v39 = vrot.slane %v2289_v32, %v2489_v33  ;;  %v2478_v40 = vrot.slane %v2289_v32, %v2477_v34 }
 0x280   : > { %v2435_v1 = vadd.f32 %v2434_v61, %v2433_v57  ;;  %v2449_v2 = vadd.f32 %v2448_v62, %v2447_v58  ;;  %v2519_v51 = vrot.slane %v2290_v35, %v2489_v33  ;;  %v2486_v52 = vrot.slane %v2289_v32, %v2485_v36 }
 0x281   : > { %v2428_v3 = vadd.f32 %v2427_v63, %v2426_v59  ;;  %v2442_v4 = vadd.f32 %v2441_v0, %v2440_v60  ;;  %v2507_v56 = vrot.slane %v2290_v35, %v2477_v34  ;;  %v2515_v57 = vrot.slane %v2290_v35, %v2485_v36 }
 0x282   : > { %v2436_v5 = vrot.slane %v2435_v1, 2  ;;  %v2450_v6 = vrot.slane %v2449_v2, 2 }
 0x283   : > { %v2429_v7 = vrot.slane %v2428_v3, 2  ;;  %v2443_v8 = vrot.slane %v2442_v4, 2 }
 0x284   : > { %v2437_v9 = vadd.f32 %v2436_v5, %v2435_v1  ;;  %v2451_v10 = vadd.f32 %v2450_v6, %v2449_v2 }
 0x285   : > { %v2430_v12 = vadd.f32 %v2429_v7, %v2428_v3  ;;  %v2444_v13 = vadd.f32 %v2443_v8, %v2442_v4 }
 0x286   : > { %v2438_v16 = vrot.slane %v2437_v9, 1  ;;  %v2452_v17 = vrot.slane %v2451_v10, 1 }
 0x287   : > { %v2431_v20 = vrot.slane %v2430_v12, 1  ;;  %v2445_v21 = vrot.slane %v2444_v13, 1 }
 0x288   : > { %v2439_v18 = vadd.f32 %v2438_v16, %v2437_v9  ;;  %v2453_v19 = vadd.f32 %v2452_v17, %v2451_v10 }
 0x289   : > { %v2432_v23 = vadd.f32 %v2431_v20, %v2430_v12  ;;  %v2446_v14 = vadd.f32 %v2445_v21, %v2444_v13 }
 0x28a   : > { %v2455_v15 = vmul.f32 %v2439_v18, %v4522_v22  ;;  %v2457_v24 = vmul.f32 %v2453_v19, %v4522_v22 }
 0x28b   : > { %v2454_v25 = vmul.f32 %v2432_v23, %v4522_v22  ;;  %v2456_v26 = vmul.f32 %v2446_v14, %v4522_v22 }
 0x28c   : > { %v2459_v27 = vadd.f32 1e-05, %v2455_v15  ;;  %v2461_v28 = vadd.f32 1e-05, %v2457_v24 }
 0x28d   : > { %v2458_v29 = vadd.f32 1e-05, %v2454_v25  ;;  %v2460_v30 = vadd.f32 1e-05, %v2456_v26 }
 0x28e   : > { %3735 = vrsqrt.f32 %v2459_v27 }
 0x28f   : > { %3737 = vrsqrt.f32 %v2461_v28 }
 0x290   : > { %3739 = vrsqrt.f32 %v2458_v29 }
 0x291   : > { %3741 = vrsqrt.f32 %v2460_v30 }
 0x298   : > { %v3736_v22 = vpop.eup %3735 }
 0x299   : > { %v3738_v49 = vpop.eup %3737  ;;  %v2467_v50 = vmul.f32 %v3736_v22, %v4557_v45  ;;  %v2471_v53 = vmul.f32 %v3736_v22, %v4561_v46 }
 0x29a   : > { %v3740_v54 = vpop.eup %3739  ;;  %v2469_v55 = vmul.f32 %v3738_v49, %v4565_v47  ;;  %v2473_v58 = vmul.f32 %v3738_v49, %v4569_v48 }
 0x29b   : > { %v3742_v11 = vpop.eup %3741  ;;  %v2496_v59 = vmul.f32 %v2482_v37, %v2467_v50  ;;  %v2466_v60 = vmul.f32 %v3740_v54, %v4541_v41  ;;  %v2500_v61 = vmul.f32 %v2482_v37, %v2471_v53  ;;  %v2470_v62 = vmul.f32 %v3740_v54, %v4545_v42 }
 0x29c   : > { %v2498_v63 = vmul.f32 %v2490_v39, %v2469_v55  ;;  %v2468_v45 = vmul.f32 %v3742_v11, %v4549_v43  ;;  %v2502_v0 = vmul.f32 %v2490_v39, %v2473_v58  ;;  %v2472_v46 = vmul.f32 %v3742_v11, %v4553_v44 }
 0x29d   : > { %v2525_v1 = vadd.f32 %v2511_v38, %v2496_v59  ;;  %v2495_v2 = vmul.f32 %v2478_v40, %v2466_v60  ;;  %v2499_v47 = vmul.f32 %v2478_v40, %v2470_v62  ;;  %v2529_v5 = vadd.f32 %v2511_v38, %v2500_v61 }
 0x29e   : > { %v2527_v3 = vadd.f32 %v2519_v51, %v2498_v63  ;;  %v2497_v4 = vmul.f32 %v2486_v52, %v2468_v45  ;;  %v2501_v48 = vmul.f32 %v2486_v52, %v2472_v46  ;;  %v2531_v8 = vadd.f32 %v2519_v51, %v2502_v0 }
 0x29f   : > { %v2533_v6 = vmax.f32 %v2525_v1, 0.0  ;;  %v2524_v7 = vadd.f32 %v2507_v56, %v2495_v2  ;;  %v2528_v43 = vadd.f32 %v2507_v56, %v2499_v47  ;;  %v2537_v44 = vmax.f32 %v2529_v5, 0.0 }
 0x2a0   : > { %v2535_v41 = vmax.f32 %v2527_v3, 0.0  ;;  %v2526_v9 = vadd.f32 %v2515_v57, %v2497_v4  ;;  %v2530_v12 = vadd.f32 %v2515_v57, %v2501_v48  ;;  %v2539_v13 = vmax.f32 %v2531_v8, 0.0 }
 0x2a1   : > { %2604 = vmatprep.mubr.f32.mxu0 %v2533_v6  ;;  %v2532_v42 = vmax.f32 %v2524_v7, 0.0  ;;  %v2536_v16 = vmax.f32 %v2528_v43, 0.0 }
 0x2a2   : > { %2679 = vmatprep.mubr.f32.mxu1 %v2535_v41  ;;  %v2534_v10 = vmax.f32 %v2526_v9, 0.0  ;;  %v2538_v17 = vmax.f32 %v2530_v12, 0.0 }
 0x2a3   : > { %2605 = vmatmul.mubr.f32.vlgmr.msra.gmra.mrb[4].mxu0 %v2532_v42 }
 0x2a4   : > { %2680 = vmatmul.mubr.f32.vlgmr.msra.gmra.mrb[4].mxu1 %v2534_v10  ;;  %2609 = vmatprep.mubr.f32.mxu0 %v2537_v44 }
 0x2a5   : > { %2684 = vmatprep.mubr.f32.mxu1 %v2539_v13 }
 0x2a7   : > { %2610 = vmatmul.mubr.f32.gmra.mrb[6].mxu0 %v2536_v16 }
 0x2a8   : > { %2685 = vmatmul.mubr.f32.gmra.mrb[6].mxu1 %v2538_v17 }
 0x376   : > { %v3151_v20 = vpop.f32.mrb[4].mxu0 }
 0x377   : > { %v3189_v21 = vpop.f32.mrb[4].mxu1  ;;  %v3152_v18 = vpop.f32.mrb[5].mxu0 }
 0x378   : > { %v3153_v19 = vadd.f32 %v3152_v18, %v3151_v20  ;;  %v3190_v23 = vpop.f32.mrb[5].mxu1 }
 0x379   : > { %v3191_v14 = vadd.f32 %v3190_v23, %v3189_v21 }
 0x37a   : > { %v3154_v15 = vpop.f32.mrb[6].mxu0 }
 0x37b   : > { %v2682_v24 = vadd.f32 %v3191_v14, %v3153_v19  ;;  %v3192_v25 = vpop.f32.mrb[6].mxu1  ;;  %v3155_v26 = vpop.f32.mrb[7].mxu0 }
 0x37c   : > { %v3156_v27 = vadd.f32 %v3155_v26, %v3154_v15  ;;  %v3193_v28 = vpop.f32.mrb[7].mxu1 }
 0x37d   : > { %2691 = vst.msk [vmem:[%s359_s23] sm:$0xff] %vm2690_vm2, %v2682_v24  ;;  %v3194_v29 = vadd.f32 %v3193_v28, %v3192_v25 }
 0x37f   : > { %v2687_v30 = vadd.f32 %v3194_v29, %v3156_v27 }
 0x381   : > { %2692 = vst.msk [vmem:[%s359_s23 + $0x8] sm:$0xff] %vm2690_vm2, %v2687_v30 }
 0x382 PF: > { %p21_p3 = scmp.ge.s32.totalorder %s3972_s0, 4   ;;  %s4659_s23 = smov %s3895_s24 }
 0x383   : > { %s4660_s24 = smov %s3899_s25  ;;  %s4661_s25 = smov %s3981_s29 }
 0x384   : > { %s4662_s26 = smov %s3972_s0  ;;  %23 = sbr.rel (!%p21_p3) target bundleno = 9 (0x9), region = 112 }
 0x38b   :  { %2714 = vsyncpa [#allocation5], 1 }
 0x38c   :  { %2716 = vsyncpa [#allocation5 + $0x1], 1 }
 0x38d   :  { %2717 = vsyncpa [#allocation7], 1 }
 0x38e   :  { %2719 = vsyncpa [#allocation7 + $0x1], 1 }
 0x38f   :  { %2720 = vsyncpa [#allocation10], 1 }
 0x390   :  { %2722 = vsyncpa [#allocation10 + $0x1], 1 }

</bundles_post_ra>
